<compile_context>
chip_gen: v7x
topology: tpu7x:2x2x1
jax: 0.10.0
libtpu: 0.0.40
codegen_flags: <defaults>
</compile_context>

<pallas_src>
import functools

import jax
import jax.numpy as jnp
from jax.experimental import pallas as pl
from jax.experimental.pallas import tpu as pltpu

NF = 32        # nf_effect
PSTEP = 3      # fixed in the PyTorch forward


def _round_up(x, m):
    return ((int(x) + m - 1) // m) * m


def _prop_kernel(rrs_ref, rrt_ref, st_ref, w_ref, out_ref, *,
                 nf, n_rel, n_par, bblk, offsets, lane_dense_out):
    relu = lambda x: jnp.maximum(x, 0.0)
    f32 = jnp.float32
    dot = lambda a, b: jnp.dot(a, b, preferred_element_type=f32)

    def W(name):                       # static slice of the packed weight slab
        off, rows = offsets[name]
        return w_ref[off:off + rows, :]

    R, N, b = n_rel, n_par, bblk

    # bf16 incidence (exact 0/1) -> upcast once in-register; the pipeline
    # buffers and HBM traffic stay half-size, accumulation is f32.
    Rrs = rrs_ref[...].astype(f32)     # [b, 2R, N]  (receiver rows, then sender)
    Rr_t = rrt_ref[...].astype(f32)    # [b, N, R]
    st = st_ref[...]                   # [b, N, 8] = (s_cur | a_cur | s_delta | a_cur)

    # --- fused receiver/sender gather of all per-particle state columns
    g = jnp.einsum('brn,bnf->brf', Rrs, st,
                   preferred_element_type=f32)                # [b, 2R, 8]
    gr = g[:, :R, :].reshape(b * R, 8)                        # receiver features
    gs = g[:, R:, :].reshape(b * R, 8)                        # sender features

    # --- ParticleEncoder: Linear(4,nf) ReLU Linear(nf,nf) ReLU
    #     (pe_w1 repacked to 8 rows; rows for s_cur/a_cur duplicates are zero)
    x = st.reshape(b * N, 8)
    h = relu(dot(x, W("pe_w1")) + W("pe_b1"))
    particle_encode = relu(dot(h, W("pe_w2")) + W("pe_b2"))   # [b*N, nf]

    # --- RelationEncoder: layer 1 uses receiver/sender-repacked weights
    #     (exactly re_in @ re_w1 with re_in = [a_r, a_s, s_r - s_s])
    h = relu(dot(gr, W("re_wr")) + dot(gs, W("re_ws")) + W("re_b1"))
    h = relu(dot(h, W("re_w2")) + W("re_b2"))
    relation_encode = relu(dot(h, W("re_w3")) + W("re_b3"))   # [b*R, nf]

    rp_w = W("rp_w")                   # [3*nf, nf]
    pp_w = W("pp_w")                   # [2*nf, nf]

    # --- loop-invariant halves of both propagators, hoisted out of the loop
    rel_base = dot(relation_encode, rp_w[0:nf, :]) + W("rp_b")    # [b*R, nf]
    part_base = dot(particle_encode, pp_w[0:nf, :]) + W("pp_b")   # [b*N, nf]
    rp_wr = rp_w[nf:2 * nf, :]
    rp_ws = rp_w[2 * nf:3 * nf, :]
    pp_wa = pp_w[nf:2 * nf, :]

    particle_effect = particle_encode                              # [b*N, nf]
    for _ in range(PSTEP):
        # one fused gather of receiver+sender effects
        eff = jnp.einsum('brn,bnf->brf', Rrs, particle_effect.reshape(b, N, nf),
                         preferred_element_type=f32)               # [b, 2R, nf]
        eff_r = eff[:, :R, :].reshape(b * R, nf)
        eff_s = eff[:, R:, :].reshape(b * R, nf)
        effect_rel = relu(rel_base + dot(eff_r, rp_wr) + dot(eff_s, rp_ws))
        # aggregation Rr^T @ effect_rel (pre-transposed Rr_t; no in-kernel .T)
        agg = jnp.einsum('bnr,brf->bnf', Rr_t, effect_rel.reshape(b, R, nf),
                         preferred_element_type=f32)               # [b, N, nf]
        particle_effect = relu(part_base
                               + dot(agg.reshape(b * N, nf), pp_wa)
                               + particle_effect)

    # --- ParticlePredictor: Linear(nf,nf) ReLU Linear(nf,3) (padded to nf lanes)
    h = relu(dot(particle_effect, W("pd_w1")) + W("pd_b1"))
    pred = dot(h, W("pd_w2")) + W("pd_b2")                         # [b*N, nf]

    out = (pred[:, 0:3] + x[:, 0:3]).reshape(b, N, 3)
    if lane_dense_out:
        out_ref[...] = jnp.swapaxes(out, 1, 2)    # [b, 3, N] lane-dense stores
    else:
        out_ref[...] = out


def _pack_weights(p, nf):
    """Pack all weights/biases into one [rows, nf] f32 slab (8-row aligned).

    The merged per-particle state columns are (s_cur(3) | a_cur | s_delta(3) |
    a_cur), so ParticleEncoder layer-1 and the RelationEncoder receiver/sender
    halves are repacked to 8 input rows (unused rows zero).
    """
    f32 = jnp.float32
    pe_w1 = p["pe_w1"].astype(f32)                                # [4, nf] (s_delta, a)
    re_w1 = p["re_w1"].astype(f32)                                # [5, nf] (a_r, a_s, s)
    zeros4 = jnp.zeros((4, nf), f32)
    pe_w1_8 = jnp.concatenate([zeros4, pe_w1], axis=0)            # [8, nf]
    re_wr = jnp.concatenate([re_w1[2:5], re_w1[0:1], zeros4], axis=0)   # [8, nf]
    re_ws = jnp.concatenate([-re_w1[2:5], re_w1[1:2], zeros4], axis=0)  # [8, nf]
    pd_w2 = jnp.pad(p["pd_w2"], ((0, 0), (0, nf - 3)))            # [nf, nf]
    pd_b2 = jnp.pad(p["pd_b2"], ((0, 0), (0, nf - 3)))            # [1, nf]

    entries = [
        ("pe_w1", pe_w1_8), ("pe_b1", p["pe_b1"]),
        ("pe_w2", p["pe_w2"]), ("pe_b2", p["pe_b2"]),
        ("re_wr", re_wr), ("re_ws", re_ws), ("re_b1", p["re_b1"]),
        ("re_w2", p["re_w2"]), ("re_b2", p["re_b2"]),
        ("re_w3", p["re_w3"]), ("re_b3", p["re_b3"]),
        ("rp_w", p["rp_w"]), ("rp_b", p["rp_b"]),
        ("pp_w", p["pp_w"]), ("pp_b", p["pp_b"]),
        ("pd_w1", p["pd_w1"]), ("pd_b1", p["pd_b1"]),
        ("pd_w2", pd_w2), ("pd_b2", pd_b2),
    ]
    offsets, chunks, row = {}, [], 0
    for name, w in entries:
        r = int(w.shape[0])
        pad = (-r) % 8                  # keep every static slice 8-sublane aligned
        wp = jnp.pad(w, ((0, pad), (0, 0))) if pad else w
        offsets[name] = (row, r)
        chunks.append(wp.astype(f32))
        row += r + pad
    return jnp.concatenate(chunks, axis=0), offsets


def _vmem_estimate(bblk, rp, np_, nf, wrows, lane_dense_out):
    """Padding-aware VMEM estimate: double-buffered blocks + intermediates."""
    lane = lambda c: _round_up(max(int(c), 1), 128)
    sub = lambda r, m=8: _round_up(max(int(r), 1), m)
    # double-buffered pipeline blocks (incidence bf16, rest f32)
    rrs = bblk * sub(2 * rp, 16) * lane(np_) * 2
    rrt = bblk * sub(np_, 16) * lane(rp) * 2
    st = bblk * sub(np_) * lane(8) * 4
    if lane_dense_out:
        out = bblk * sub(3) * lane(np_) * 4
    else:
        out = bblk * sub(np_) * lane(3) * 4
    w = sub(wrows) * lane(nf) * 4
    blocks = 2 * (rrs + rrt + st + out + w)
    # in-kernel f32 intermediates (incidence upcasts + MLP temporaries)
    inter = 4 * (
        bblk * sub(2 * rp) * lane(np_)          # Rrs upcast
        + bblk * sub(np_) * lane(rp)            # Rr^T upcast
        + 4 * bblk * sub(2 * rp) * lane(nf)     # g / eff / eff_r / eff_s
        + 6 * bblk * sub(rp) * lane(nf)         # relation-path temporaries
        + 7 * bblk * sub(np_) * lane(nf)        # particle-path temporaries
    )
    return blocks + inter + (2 << 20)           # headroom


def _vmem_budget_bytes():
    try:
        cap = int(pltpu.get_tpu_info().vmem_capacity_bytes)
    except Exception:
        cap = 64 << 20          # conservative fallback (v7x per-core VMEM)
    return int(cap * 0.8)


def prop_module_diff_den(a_cur, s_cur, s_delta, Rr, Rs, params, *,
                         bblk=None, nf=NF, incidence_dtype=jnp.bfloat16):
    """Pallas implementation of PropModuleDiffDen.forward."""
    B, N = a_cur.shape
    _, R, _ = Rr.shape
    assert nf % 8 == 0

    # pad particle / relation counts to sublane multiples; zero rows/cols of
    # the incidence matrices contribute nothing and outputs are sliced back.
    Np, Rp = _round_up(N, 8), _round_up(R, 8)
    pn, pr = Np - N, Rp - R

    a3 = a_cur[..., None].astype(jnp.float32)
    st = jnp.concatenate(
        [s_cur.astype(jnp.float32), a3, s_delta.astype(jnp.float32), a3],
        axis=-1)                                                       # [B,N,8]
    if pn:
        st = jnp.pad(st, ((0, 0), (0, pn), (0, 0)))
    Rrp = jnp.pad(Rr, ((0, 0), (0, pr), (0, pn))) if (pr or pn) else Rr
    Rsp = jnp.pad(Rs, ((0, 0), (0, pr), (0, pn))) if (pr or pn) else Rs
    # 0/1 incidence values are exact in bf16 -> lossless, half the HBM bytes
    rrs = jnp.concatenate([Rrp, Rsp], axis=1).astype(incidence_dtype)  # [B,2Rp,Np]
    rr_t = jnp.swapaxes(Rrp, 1, 2).astype(incidence_dtype)             # [B,Np,Rp]

    w_packed, offsets = _pack_weights(params, nf)
    wrows = int(w_packed.shape[0])

    lane_dense_out = Np >= 128
    budget = _vmem_budget_bytes()

    if bblk is None:
        divisors = [d for d in range(1, B + 1) if B % d == 0]
        fits = [d for d in divisors
                if _vmem_estimate(d, Rp, Np, nf, wrows, lane_dense_out) <= budget]
        if not fits:
            fits = [1]   # TODO(synk): tile R when even bblk=1 blows the budget
        # default: single grid step (best MXU fill, least per-step overhead —
        # on 1-TC chips the grid is just a serial loop).
        bblk = fits[-1]
        # v7x megacore: split into >=2 parallel grid steps only when each step
        # still carries substantial MXU work; otherwise splitting tiny work
        # doubles fixed step cost and halves per-core fill.
        two = [d for d in fits if B // d >= 2 and d * Rp >= 256 and d * Np >= 128]
        if two:
            bblk = two[-1]
    assert B % bblk == 0
    grid_b = B // bblk

    est = _vmem_estimate(bblk, Rp, Np, nf, wrows, lane_dense_out)
    vmem_bytes = int(min(max(2 * est, 16 << 20), budget))

    kernel = functools.partial(_prop_kernel, nf=nf, n_rel=Rp, n_par=Np,
                               bblk=bblk, offsets=offsets,
                               lane_dense_out=lane_dense_out)

    in_specs = [
        pl.BlockSpec((bblk, 2 * Rp, Np), lambda b: (b, 0, 0)),  # Rr|Rs (bf16)
        pl.BlockSpec((bblk, Np, Rp), lambda b: (b, 0, 0)),      # Rr^T  (bf16)
        pl.BlockSpec((bblk, Np, 8), lambda b: (b, 0, 0)),       # packed state
        pl.BlockSpec((wrows, nf), lambda b: (0, 0)),            # weight slab
    ]
    if lane_dense_out:
        out_spec = pl.BlockSpec((bblk, 3, Np), lambda b: (b, 0, 0))
        out_shape = jax.ShapeDtypeStruct((B, 3, Np), jnp.float32)
    else:
        out_spec = pl.BlockSpec((bblk, Np, 3), lambda b: (b, 0, 0))
        out_shape = jax.ShapeDtypeStruct((B, Np, 3), jnp.float32)

    fn = pl.pallas_call(
        kernel,
        out_shape=out_shape,
        grid=(grid_b,),
        in_specs=in_specs,
        out_specs=out_spec,
        compiler_params=pltpu.CompilerParams(
            dimension_semantics=("parallel",),
            vmem_limit_bytes=vmem_bytes),
    )
    out = fn(rrs, rr_t, st, w_packed)
    if lane_dense_out:
        out = jnp.swapaxes(out, 1, 2)
    return out[:, :N, :]


def init_params(key, nf=NF):
    """Deterministic synthetic parameters.  Weights stored as [in, out]."""
    shapes = {
        "pe_w1": (4, nf), "pe_b1": (1, nf),
        "pe_w2": (nf, nf), "pe_b2": (1, nf),
        "re_w1": (5, nf), "re_b1": (1, nf),
        "re_w2": (nf, nf), "re_b2": (1, nf),
        "re_w3": (nf, nf), "re_b3": (1, nf),
        "rp_w": (3 * nf, nf), "rp_b": (1, nf),
        "pp_w": (2 * nf, nf), "pp_b": (1, nf),
        "pd_w1": (nf, nf), "pd_b1": (1, nf),
        "pd_w2": (nf, 3), "pd_b2": (1, 3),
    }
    params = {}
    keys = jax.random.split(key, len(shapes))
    for k, (name, shp) in zip(keys, sorted(shapes.items())):
        params[name] = (0.1 * jax.random.normal(k, shp)).astype(jnp.float32)
    return params


def prop_module_reference(a_cur, s_cur, s_delta, Rr, Rs, p):
    """Pure-JAX reference (same math as the PyTorch forward)."""
    relu = lambda x: jnp.maximum(x, 0.0)
    a3 = a_cur[..., None]
    Rr_t = jnp.swapaxes(Rr, 1, 2)
    a_r = Rr @ a3
    a_s = Rs @ a3
    s_r = Rr @ s_cur
    s_s = Rs @ s_cur
    pe_in = jnp.concatenate([s_delta, a3], axis=-1)
    pe = relu(relu(pe_in @ p["pe_w1"] + p["pe_b1"]) @ p["pe_w2"] + p["pe_b2"])
    re_in = jnp.concatenate([a_r, a_s, s_r - s_s], axis=-1)
    h = relu(re_in @ p["re_w1"] + p["re_b1"])
    h = relu(h @ p["re_w2"] + p["re_b2"])
    re = relu(h @ p["re_w3"] + p["re_b3"])
    eff = pe
    for _ in range(PSTEP):
        er = Rr @ eff
        es = Rs @ eff
        rel_in = jnp.concatenate([re, er, es], axis=-1)
        eff_rel = relu(rel_in @ p["rp_w"] + p["rp_b"])
        agg = Rr_t @ eff_rel
        pp_in = jnp.concatenate([pe, agg], axis=-1)
        eff = relu(pp_in @ p["pp_w"] + p["pp_b"] + eff)
    h = relu(eff @ p["pd_w1"] + p["pd_b1"])
    pred = h @ p["pd_w2"] + p["pd_b2"]
    return pred + s_cur


if __name__ == "__main__":
    key = jax.random.PRNGKey(0)
    B, N, R = 2, 16, 32

    k_p, k_a, k_s, k_sd, k_rr, k_rs = jax.random.split(key, 6)
    params = init_params(k_p)

    a_cur = jax.random.normal(k_a, (B, N), dtype=jnp.float32)
    s_cur = jax.random.normal(k_s, (B, N, 3), dtype=jnp.float32)
    s_delta = 0.1 * jax.random.normal(k_sd, (B, N, 3), dtype=jnp.float32)
    # synthetic (0/1-valued) incidence matrices; semantics only require bmm
    Rr = (jax.random.uniform(k_rr, (B, R, N)) < 0.2).astype(jnp.float32)
    Rs = (jax.random.uniform(k_rs, (B, R, N)) < 0.2).astype(jnp.float32)

    out = prop_module_diff_den(a_cur, s_cur, s_delta, Rr, Rs, params)
    out = jax.block_until_ready(out)

    ref = prop_module_reference(a_cur, s_cur, s_delta, Rr, Rs, params)
    assert out.shape == (B, N, 3)
    assert jnp.allclose(out, ref, atol=1e-3, rtol=1e-3), "mismatch vs reference"

    print("KERNEL_OK")
</pallas_src>

<mosaic_0001>
module attributes {stable_mosaic.version = 11 : i64} {
  func.func @_prop_kernel(%arg0: i32, %arg1: memref<2x64x16xbf16, #tpu.memory_space<vmem>>, %arg2: memref<2x16x32xbf16, #tpu.memory_space<vmem>>, %arg3: memref<2x16x8xf32, #tpu.memory_space<vmem>>, %arg4: memref<416x32xf32, #tpu.memory_space<vmem>>, %arg5: memref<2x16x3xf32, #tpu.memory_space<vmem>>) attributes {dimension_semantics = [#tpu.dimension_semantics<parallel>], iteration_bounds = array<i64: 1>, scalar_prefetch = 0 : i64, scratch_operands = 0 : i64, tpu.core_type = #tpu.core_type<tc>, window_params = [{transform_indices = @transform_0, window_bounds = array<i64: 2, 64, 16>}, {transform_indices = @transform_1, window_bounds = array<i64: 2, 16, 32>}, {transform_indices = @transform_2, window_bounds = array<i64: 2, 16, 8>}, {pipeline_mode = #tpu.pipeline_mode<synchronous>, transform_indices = @transform_3, window_bounds = array<i64: 416, 32>}, {transform_indices = @transform_4, window_bounds = array<i64: 2, 16, 3>}]} {
    %c0 = arith.constant 0 : index
    %c0_0 = arith.constant 0 : index
    %c0_1 = arith.constant 0 : index
    %0 = vector.load %arg1[%c0, %c0_0, %c0_1] : memref<2x64x16xbf16, #tpu.memory_space<vmem>>, vector<2x64x16xbf16>
    %1 = arith.extf %0 : vector<2x64x16xbf16> to vector<2x64x16xf32>
    %c0_2 = arith.constant 0 : index
    %c0_3 = arith.constant 0 : index
    %c0_4 = arith.constant 0 : index
    %2 = vector.load %arg2[%c0_2, %c0_3, %c0_4] : memref<2x16x32xbf16, #tpu.memory_space<vmem>>, vector<2x16x32xbf16>
    %3 = arith.extf %2 : vector<2x16x32xbf16> to vector<2x16x32xf32>
    %c0_5 = arith.constant 0 : index
    %c0_6 = arith.constant 0 : index
    %c0_7 = arith.constant 0 : index
    %4 = vector.load %arg3[%c0_5, %c0_6, %c0_7] : memref<2x16x8xf32, #tpu.memory_space<vmem>>, vector<2x16x8xf32>
    "tpu.trace_start"() <{level = 10 : i32, message = "brn,bnf->brf"}> : () -> ()
    %cst = arith.constant dense<0.000000e+00> : vector<2x64x8xf32>
    %5 = tpu.matmul %1, %4, %cst {dimension_numbers = #tpu.dot_dimension_numbers<[2], [1], [1], [2], [0, 0, 0, 1, 1, 2], [0], [0]>} : vector<2x64x16xf32>, vector<2x16x8xf32>, vector<2x64x8xf32> -> vector<2x64x8xf32>
    "tpu.trace_stop"() : () -> ()
    %6 = vector.extract_strided_slice %5 {offsets = [0, 0, 0], sizes = [2, 32, 8], strides = [1, 1, 1]} : vector<2x64x8xf32> to vector<2x32x8xf32>
    %7 = vector.shape_cast %6 : vector<2x32x8xf32> to vector<64x8xf32>
    %8 = vector.extract_strided_slice %5 {offsets = [0, 32, 0], sizes = [2, 32, 8], strides = [1, 1, 1]} : vector<2x64x8xf32> to vector<2x32x8xf32>
    %9 = vector.shape_cast %8 : vector<2x32x8xf32> to vector<64x8xf32>
    %10 = vector.shape_cast %4 : vector<2x16x8xf32> to vector<32x8xf32>
    %c0_8 = arith.constant 0 : index
    %c0_9 = arith.constant 0 : index
    %11 = vector.load %arg4[%c0_8, %c0_9] : memref<416x32xf32, #tpu.memory_space<vmem>>, vector<8x32xf32>
    %cst_10 = arith.constant dense<0.000000e+00> : vector<32x32xf32>
    %12 = tpu.matmul %10, %11, %cst_10 {dimension_numbers = #tpu.dot_dimension_numbers<[1], [0], [0], [1], [0, 0, 1, 1], [], []>} : vector<32x8xf32>, vector<8x32xf32>, vector<32x32xf32> -> vector<32x32xf32>
    %c8 = arith.constant 8 : index
    %c0_11 = arith.constant 0 : index
    %13 = vector.load %arg4[%c8, %c0_11] : memref<416x32xf32, #tpu.memory_space<vmem>>, vector<1x32xf32>
    %14 = vector.broadcast %13 : vector<1x32xf32> to vector<32x32xf32>
    %15 = arith.addf %12, %14 : vector<32x32xf32>
    %cst_12 = arith.constant 0.000000e+00 : f32
    %16 = vector.broadcast %cst_12 : f32 to vector<32x32xf32>
    %17 = arith.maximumf %15, %16 : vector<32x32xf32>
    %c16 = arith.constant 16 : index
    %c0_13 = arith.constant 0 : index
    %18 = vector.load %arg4[%c16, %c0_13] : memref<416x32xf32, #tpu.memory_space<vmem>>, vector<32x32xf32>
    %cst_14 = arith.constant dense<0.000000e+00> : vector<32x32xf32>
    %19 = tpu.matmul %17, %18, %cst_14 {dimension_numbers = #tpu.dot_dimension_numbers<[1], [0], [0], [1], [0, 0, 1, 1], [], []>} : vector<32x32xf32>, vector<32x32xf32>, vector<32x32xf32> -> vector<32x32xf32>
    %c48 = arith.constant 48 : index
    %c0_15 = arith.constant 0 : index
    %20 = vector.load %arg4[%c48, %c0_15] : memref<416x32xf32, #tpu.memory_space<vmem>>, vector<1x32xf32>
    %21 = vector.broadcast %20 : vector<1x32xf32> to vector<32x32xf32>
    %22 = arith.addf %19, %21 : vector<32x32xf32>
    %cst_16 = arith.constant 0.000000e+00 : f32
    %23 = vector.broadcast %cst_16 : f32 to vector<32x32xf32>
    %24 = arith.maximumf %22, %23 : vector<32x32xf32>
    %c56 = arith.constant 56 : index
    %c0_17 = arith.constant 0 : index
    %25 = vector.load %arg4[%c56, %c0_17] : memref<416x32xf32, #tpu.memory_space<vmem>>, vector<8x32xf32>
    %cst_18 = arith.constant dense<0.000000e+00> : vector<64x32xf32>
    %26 = tpu.matmul %7, %25, %cst_18 {dimension_numbers = #tpu.dot_dimension_numbers<[1], [0], [0], [1], [0, 0, 1, 1], [], []>} : vector<64x8xf32>, vector<8x32xf32>, vector<64x32xf32> -> vector<64x32xf32>
    %c64 = arith.constant 64 : index
    %c0_19 = arith.constant 0 : index
    %27 = vector.load %arg4[%c64, %c0_19] : memref<416x32xf32, #tpu.memory_space<vmem>>, vector<8x32xf32>
    %cst_20 = arith.constant dense<0.000000e+00> : vector<64x32xf32>
    %28 = tpu.matmul %9, %27, %cst_20 {dimension_numbers = #tpu.dot_dimension_numbers<[1], [0], [0], [1], [0, 0, 1, 1], [], []>} : vector<64x8xf32>, vector<8x32xf32>, vector<64x32xf32> -> vector<64x32xf32>
    %29 = arith.addf %26, %28 : vector<64x32xf32>
    %c72 = arith.constant 72 : index
    %c0_21 = arith.constant 0 : index
    %30 = vector.load %arg4[%c72, %c0_21] : memref<416x32xf32, #tpu.memory_space<vmem>>, vector<1x32xf32>
    %31 = vector.broadcast %30 : vector<1x32xf32> to vector<64x32xf32>
    %32 = arith.addf %29, %31 : vector<64x32xf32>
    %cst_22 = arith.constant 0.000000e+00 : f32
    %33 = vector.broadcast %cst_22 : f32 to vector<64x32xf32>
    %34 = arith.maximumf %32, %33 : vector<64x32xf32>
    %c80 = arith.constant 80 : index
    %c0_23 = arith.constant 0 : index
    %35 = vector.load %arg4[%c80, %c0_23] : memref<416x32xf32, #tpu.memory_space<vmem>>, vector<32x32xf32>
    %cst_24 = arith.constant dense<0.000000e+00> : vector<64x32xf32>
    %36 = tpu.matmul %34, %35, %cst_24 {dimension_numbers = #tpu.dot_dimension_numbers<[1], [0], [0], [1], [0, 0, 1, 1], [], []>} : vector<64x32xf32>, vector<32x32xf32>, vector<64x32xf32> -> vector<64x32xf32>
    %c112 = arith.constant 112 : index
    %c0_25 = arith.constant 0 : index
    %37 = vector.load %arg4[%c112, %c0_25] : memref<416x32xf32, #tpu.memory_space<vmem>>, vector<1x32xf32>
    %38 = vector.broadcast %37 : vector<1x32xf32> to vector<64x32xf32>
    %39 = arith.addf %36, %38 : vector<64x32xf32>
    %cst_26 = arith.constant 0.000000e+00 : f32
    %40 = vector.broadcast %cst_26 : f32 to vector<64x32xf32>
    %41 = arith.maximumf %39, %40 : vector<64x32xf32>
    %c120 = arith.constant 120 : index
    %c0_27 = arith.constant 0 : index
    %42 = vector.load %arg4[%c120, %c0_27] : memref<416x32xf32, #tpu.memory_space<vmem>>, vector<32x32xf32>
    %cst_28 = arith.constant dense<0.000000e+00> : vector<64x32xf32>
    %43 = tpu.matmul %41, %42, %cst_28 {dimension_numbers = #tpu.dot_dimension_numbers<[1], [0], [0], [1], [0, 0, 1, 1], [], []>} : vector<64x32xf32>, vector<32x32xf32>, vector<64x32xf32> -> vector<64x32xf32>
    %c152 = arith.constant 152 : index
    %c0_29 = arith.constant 0 : index
    %44 = vector.load %arg4[%c152, %c0_29] : memref<416x32xf32, #tpu.memory_space<vmem>>, vector<1x32xf32>
    %45 = vector.broadcast %44 : vector<1x32xf32> to vector<64x32xf32>
    %46 = arith.addf %43, %45 : vector<64x32xf32>
    %cst_30 = arith.constant 0.000000e+00 : f32
    %47 = vector.broadcast %cst_30 : f32 to vector<64x32xf32>
    %48 = arith.maximumf %46, %47 : vector<64x32xf32>
    %c160 = arith.constant 160 : index
    %c0_31 = arith.constant 0 : index
    %49 = vector.load %arg4[%c160, %c0_31] : memref<416x32xf32, #tpu.memory_space<vmem>>, vector<96x32xf32>
    %c264 = arith.constant 264 : index
    %c0_32 = arith.constant 0 : index
    %50 = vector.load %arg4[%c264, %c0_32] : memref<416x32xf32, #tpu.memory_space<vmem>>, vector<64x32xf32>
    %51 = vector.extract_strided_slice %49 {offsets = [0, 0], sizes = [32, 32], strides = [1, 1]} : vector<96x32xf32> to vector<32x32xf32>
    %cst_33 = arith.constant dense<0.000000e+00> : vector<64x32xf32>
    %52 = tpu.matmul %48, %51, %cst_33 {dimension_numbers = #tpu.dot_dimension_numbers<[1], [0], [0], [1], [0, 0, 1, 1], [], []>} : vector<64x32xf32>, vector<32x32xf32>, vector<64x32xf32> -> vector<64x32xf32>
    %c256 = arith.constant 256 : index
    %c0_34 = arith.constant 0 : index
    %53 = vector.load %arg4[%c256, %c0_34] : memref<416x32xf32, #tpu.memory_space<vmem>>, vector<1x32xf32>
    %54 = vector.broadcast %53 : vector<1x32xf32> to vector<64x32xf32>
    %55 = arith.addf %52, %54 : vector<64x32xf32>
    %56 = vector.extract_strided_slice %50 {offsets = [0, 0], sizes = [32, 32], strides = [1, 1]} : vector<64x32xf32> to vector<32x32xf32>
    %cst_35 = arith.constant dense<0.000000e+00> : vector<32x32xf32>
    %57 = tpu.matmul %24, %56, %cst_35 {dimension_numbers = #tpu.dot_dimension_numbers<[1], [0], [0], [1], [0, 0, 1, 1], [], []>} : vector<32x32xf32>, vector<32x32xf32>, vector<32x32xf32> -> vector<32x32xf32>
    %c328 = arith.constant 328 : index
    %c0_36 = arith.constant 0 : index
    %58 = vector.load %arg4[%c328, %c0_36] : memref<416x32xf32, #tpu.memory_space<vmem>>, vector<1x32xf32>
    %59 = vector.broadcast %58 : vector<1x32xf32> to vector<32x32xf32>
    %60 = arith.addf %57, %59 : vector<32x32xf32>
    %61 = vector.extract_strided_slice %49 {offsets = [32, 0], sizes = [32, 32], strides = [1, 1]} : vector<96x32xf32> to vector<32x32xf32>
    %62 = vector.extract_strided_slice %49 {offsets = [64, 0], sizes = [32, 32], strides = [1, 1]} : vector<96x32xf32> to vector<32x32xf32>
    %63 = vector.extract_strided_slice %50 {offsets = [32, 0], sizes = [32, 32], strides = [1, 1]} : vector<64x32xf32> to vector<32x32xf32>
    %64 = vector.shape_cast %24 : vector<32x32xf32> to vector<2x16x32xf32>
    "tpu.trace_start"() <{level = 10 : i32, message = "brn,bnf->brf"}> : () -> ()
    %cst_37 = arith.constant dense<0.000000e+00> : vector<2x64x32xf32>
    %65 = tpu.matmul %1, %64, %cst_37 {dimension_numbers = #tpu.dot_dimension_numbers<[2], [1], [1], [2], [0, 0, 0, 1, 1, 2], [0], [0]>} : vector<2x64x16xf32>, vector<2x16x32xf32>, vector<2x64x32xf32> -> vector<2x64x32xf32>
    "tpu.trace_stop"() : () -> ()
    %66 = vector.extract_strided_slice %65 {offsets = [0, 0, 0], sizes = [2, 32, 32], strides = [1, 1, 1]} : vector<2x64x32xf32> to vector<2x32x32xf32>
    %67 = vector.shape_cast %66 : vector<2x32x32xf32> to vector<64x32xf32>
    %68 = vector.extract_strided_slice %65 {offsets = [0, 32, 0], sizes = [2, 32, 32], strides = [1, 1, 1]} : vector<2x64x32xf32> to vector<2x32x32xf32>
    %69 = vector.shape_cast %68 : vector<2x32x32xf32> to vector<64x32xf32>
    %cst_38 = arith.constant dense<0.000000e+00> : vector<64x32xf32>
    %70 = tpu.matmul %67, %61, %cst_38 {dimension_numbers = #tpu.dot_dimension_numbers<[1], [0], [0], [1], [0, 0, 1, 1], [], []>} : vector<64x32xf32>, vector<32x32xf32>, vector<64x32xf32> -> vector<64x32xf32>
    %71 = arith.addf %55, %70 : vector<64x32xf32>
    %cst_39 = arith.constant dense<0.000000e+00> : vector<64x32xf32>
    %72 = tpu.matmul %69, %62, %cst_39 {dimension_numbers = #tpu.dot_dimension_numbers<[1], [0], [0], [1], [0, 0, 1, 1], [], []>} : vector<64x32xf32>, vector<32x32xf32>, vector<64x32xf32> -> vector<64x32xf32>
    %73 = arith.addf %71, %72 : vector<64x32xf32>
    %cst_40 = arith.constant 0.000000e+00 : f32
    %74 = vector.broadcast %cst_40 : f32 to vector<64x32xf32>
    %75 = arith.maximumf %73, %74 : vector<64x32xf32>
    %76 = vector.shape_cast %75 : vector<64x32xf32> to vector<2x32x32xf32>
    "tpu.trace_start"() <{level = 10 : i32, message = "bnr,brf->bnf"}> : () -> ()
    %cst_41 = arith.constant dense<0.000000e+00> : vector<2x16x32xf32>
    %77 = tpu.matmul %3, %76, %cst_41 {dimension_numbers = #tpu.dot_dimension_numbers<[2], [1], [1], [2], [0, 0, 0, 1, 1, 2], [0], [0]>} : vector<2x16x32xf32>, vector<2x32x32xf32>, vector<2x16x32xf32> -> vector<2x16x32xf32>
    "tpu.trace_stop"() : () -> ()
    %78 = vector.shape_cast %77 : vector<2x16x32xf32> to vector<32x32xf32>
    %cst_42 = arith.constant dense<0.000000e+00> : vector<32x32xf32>
    %79 = tpu.matmul %78, %63, %cst_42 {dimension_numbers = #tpu.dot_dimension_numbers<[1], [0], [0], [1], [0, 0, 1, 1], [], []>} : vector<32x32xf32>, vector<32x32xf32>, vector<32x32xf32> -> vector<32x32xf32>
    %80 = arith.addf %60, %79 : vector<32x32xf32>
    %81 = arith.addf %80, %24 : vector<32x32xf32>
    %cst_43 = arith.constant 0.000000e+00 : f32
    %82 = vector.broadcast %cst_43 : f32 to vector<32x32xf32>
    %83 = arith.maximumf %81, %82 : vector<32x32xf32>
    %84 = vector.shape_cast %83 : vector<32x32xf32> to vector<2x16x32xf32>
    "tpu.trace_start"() <{level = 10 : i32, message = "brn,bnf->brf"}> : () -> ()
    %cst_44 = arith.constant dense<0.000000e+00> : vector<2x64x32xf32>
    %85 = tpu.matmul %1, %84, %cst_44 {dimension_numbers = #tpu.dot_dimension_numbers<[2], [1], [1], [2], [0, 0, 0, 1, 1, 2], [0], [0]>} : vector<2x64x16xf32>, vector<2x16x32xf32>, vector<2x64x32xf32> -> vector<2x64x32xf32>
    "tpu.trace_stop"() : () -> ()
    %86 = vector.extract_strided_slice %85 {offsets = [0, 0, 0], sizes = [2, 32, 32], strides = [1, 1, 1]} : vector<2x64x32xf32> to vector<2x32x32xf32>
    %87 = vector.shape_cast %86 : vector<2x32x32xf32> to vector<64x32xf32>
    %88 = vector.extract_strided_slice %85 {offsets = [0, 32, 0], sizes = [2, 32, 32], strides = [1, 1, 1]} : vector<2x64x32xf32> to vector<2x32x32xf32>
    %89 = vector.shape_cast %88 : vector<2x32x32xf32> to vector<64x32xf32>
    %cst_45 = arith.constant dense<0.000000e+00> : vector<64x32xf32>
    %90 = tpu.matmul %87, %61, %cst_45 {dimension_numbers = #tpu.dot_dimension_numbers<[1], [0], [0], [1], [0, 0, 1, 1], [], []>} : vector<64x32xf32>, vector<32x32xf32>, vector<64x32xf32> -> vector<64x32xf32>
    %91 = arith.addf %55, %90 : vector<64x32xf32>
    %cst_46 = arith.constant dense<0.000000e+00> : vector<64x32xf32>
    %92 = tpu.matmul %89, %62, %cst_46 {dimension_numbers = #tpu.dot_dimension_numbers<[1], [0], [0], [1], [0, 0, 1, 1], [], []>} : vector<64x32xf32>, vector<32x32xf32>, vector<64x32xf32> -> vector<64x32xf32>
    %93 = arith.addf %91, %92 : vector<64x32xf32>
    %cst_47 = arith.constant 0.000000e+00 : f32
    %94 = vector.broadcast %cst_47 : f32 to vector<64x32xf32>
    %95 = arith.maximumf %93, %94 : vector<64x32xf32>
    %96 = vector.shape_cast %95 : vector<64x32xf32> to vector<2x32x32xf32>
    "tpu.trace_start"() <{level = 10 : i32, message = "bnr,brf->bnf"}> : () -> ()
    %cst_48 = arith.constant dense<0.000000e+00> : vector<2x16x32xf32>
    %97 = tpu.matmul %3, %96, %cst_48 {dimension_numbers = #tpu.dot_dimension_numbers<[2], [1], [1], [2], [0, 0, 0, 1, 1, 2], [0], [0]>} : vector<2x16x32xf32>, vector<2x32x32xf32>, vector<2x16x32xf32> -> vector<2x16x32xf32>
    "tpu.trace_stop"() : () -> ()
    %98 = vector.shape_cast %97 : vector<2x16x32xf32> to vector<32x32xf32>
    %cst_49 = arith.constant dense<0.000000e+00> : vector<32x32xf32>
    %99 = tpu.matmul %98, %63, %cst_49 {dimension_numbers = #tpu.dot_dimension_numbers<[1], [0], [0], [1], [0, 0, 1, 1], [], []>} : vector<32x32xf32>, vector<32x32xf32>, vector<32x32xf32> -> vector<32x32xf32>
    %100 = arith.addf %60, %99 : vector<32x32xf32>
    %101 = arith.addf %100, %83 : vector<32x32xf32>
    %cst_50 = arith.constant 0.000000e+00 : f32
    %102 = vector.broadcast %cst_50 : f32 to vector<32x32xf32>
    %103 = arith.maximumf %101, %102 : vector<32x32xf32>
    %104 = vector.shape_cast %103 : vector<32x32xf32> to vector<2x16x32xf32>
    "tpu.trace_start"() <{level = 10 : i32, message = "brn,bnf->brf"}> : () -> ()
    %cst_51 = arith.constant dense<0.000000e+00> : vector<2x64x32xf32>
    %105 = tpu.matmul %1, %104, %cst_51 {dimension_numbers = #tpu.dot_dimension_numbers<[2], [1], [1], [2], [0, 0, 0, 1, 1, 2], [0], [0]>} : vector<2x64x16xf32>, vector<2x16x32xf32>, vector<2x64x32xf32> -> vector<2x64x32xf32>
    "tpu.trace_stop"() : () -> ()
    %106 = vector.extract_strided_slice %105 {offsets = [0, 0, 0], sizes = [2, 32, 32], strides = [1, 1, 1]} : vector<2x64x32xf32> to vector<2x32x32xf32>
    %107 = vector.shape_cast %106 : vector<2x32x32xf32> to vector<64x32xf32>
    %108 = vector.extract_strided_slice %105 {offsets = [0, 32, 0], sizes = [2, 32, 32], strides = [1, 1, 1]} : vector<2x64x32xf32> to vector<2x32x32xf32>
    %109 = vector.shape_cast %108 : vector<2x32x32xf32> to vector<64x32xf32>
    %cst_52 = arith.constant dense<0.000000e+00> : vector<64x32xf32>
    %110 = tpu.matmul %107, %61, %cst_52 {dimension_numbers = #tpu.dot_dimension_numbers<[1], [0], [0], [1], [0, 0, 1, 1], [], []>} : vector<64x32xf32>, vector<32x32xf32>, vector<64x32xf32> -> vector<64x32xf32>
    %111 = arith.addf %55, %110 : vector<64x32xf32>
    %cst_53 = arith.constant dense<0.000000e+00> : vector<64x32xf32>
    %112 = tpu.matmul %109, %62, %cst_53 {dimension_numbers = #tpu.dot_dimension_numbers<[1], [0], [0], [1], [0, 0, 1, 1], [], []>} : vector<64x32xf32>, vector<32x32xf32>, vector<64x32xf32> -> vector<64x32xf32>
    %113 = arith.addf %111, %112 : vector<64x32xf32>
    %cst_54 = arith.constant 0.000000e+00 : f32
    %114 = vector.broadcast %cst_54 : f32 to vector<64x32xf32>
    %115 = arith.maximumf %113, %114 : vector<64x32xf32>
    %116 = vector.shape_cast %115 : vector<64x32xf32> to vector<2x32x32xf32>
    "tpu.trace_start"() <{level = 10 : i32, message = "bnr,brf->bnf"}> : () -> ()
    %cst_55 = arith.constant dense<0.000000e+00> : vector<2x16x32xf32>
    %117 = tpu.matmul %3, %116, %cst_55 {dimension_numbers = #tpu.dot_dimension_numbers<[2], [1], [1], [2], [0, 0, 0, 1, 1, 2], [0], [0]>} : vector<2x16x32xf32>, vector<2x32x32xf32>, vector<2x16x32xf32> -> vector<2x16x32xf32>
    "tpu.trace_stop"() : () -> ()
    %118 = vector.shape_cast %117 : vector<2x16x32xf32> to vector<32x32xf32>
    %cst_56 = arith.constant dense<0.000000e+00> : vector<32x32xf32>
    %119 = tpu.matmul %118, %63, %cst_56 {dimension_numbers = #tpu.dot_dimension_numbers<[1], [0], [0], [1], [0, 0, 1, 1], [], []>} : vector<32x32xf32>, vector<32x32xf32>, vector<32x32xf32> -> vector<32x32xf32>
    %120 = arith.addf %60, %119 : vector<32x32xf32>
    %121 = arith.addf %120, %103 : vector<32x32xf32>
    %cst_57 = arith.constant 0.000000e+00 : f32
    %122 = vector.broadcast %cst_57 : f32 to vector<32x32xf32>
    %123 = arith.maximumf %121, %122 : vector<32x32xf32>
    %c336 = arith.constant 336 : index
    %c0_58 = arith.constant 0 : index
    %124 = vector.load %arg4[%c336, %c0_58] : memref<416x32xf32, #tpu.memory_space<vmem>>, vector<32x32xf32>
    %cst_59 = arith.constant dense<0.000000e+00> : vector<32x32xf32>
    %125 = tpu.matmul %123, %124, %cst_59 {dimension_numbers = #tpu.dot_dimension_numbers<[1], [0], [0], [1], [0, 0, 1, 1], [], []>} : vector<32x32xf32>, vector<32x32xf32>, vector<32x32xf32> -> vector<32x32xf32>
    %c368 = arith.constant 368 : index
    %c0_60 = arith.constant 0 : index
    %126 = vector.load %arg4[%c368, %c0_60] : memref<416x32xf32, #tpu.memory_space<vmem>>, vector<1x32xf32>
    %127 = vector.broadcast %126 : vector<1x32xf32> to vector<32x32xf32>
    %128 = arith.addf %125, %127 : vector<32x32xf32>
    %cst_61 = arith.constant 0.000000e+00 : f32
    %129 = vector.broadcast %cst_61 : f32 to vector<32x32xf32>
    %130 = arith.maximumf %128, %129 : vector<32x32xf32>
    %c376 = arith.constant 376 : index
    %c0_62 = arith.constant 0 : index
    %131 = vector.load %arg4[%c376, %c0_62] : memref<416x32xf32, #tpu.memory_space<vmem>>, vector<32x32xf32>
    %cst_63 = arith.constant dense<0.000000e+00> : vector<32x32xf32>
    %132 = tpu.matmul %130, %131, %cst_63 {dimension_numbers = #tpu.dot_dimension_numbers<[1], [0], [0], [1], [0, 0, 1, 1], [], []>} : vector<32x32xf32>, vector<32x32xf32>, vector<32x32xf32> -> vector<32x32xf32>
    %c408 = arith.constant 408 : index
    %c0_64 = arith.constant 0 : index
    %133 = vector.load %arg4[%c408, %c0_64] : memref<416x32xf32, #tpu.memory_space<vmem>>, vector<1x32xf32>
    %134 = vector.broadcast %133 : vector<1x32xf32> to vector<32x32xf32>
    %135 = arith.addf %132, %134 : vector<32x32xf32>
    %136 = vector.extract_strided_slice %135 {offsets = [0, 0], sizes = [32, 3], strides = [1, 1]} : vector<32x32xf32> to vector<32x3xf32>
    %137 = vector.extract_strided_slice %10 {offsets = [0, 0], sizes = [32, 3], strides = [1, 1]} : vector<32x8xf32> to vector<32x3xf32>
    %138 = arith.addf %136, %137 : vector<32x3xf32>
    %139 = vector.shape_cast %138 : vector<32x3xf32> to vector<2x16x3xf32>
    %c0_65 = arith.constant 0 : index
    %c0_66 = arith.constant 0 : index
    %c0_67 = arith.constant 0 : index
    %140 = vector.load %arg5[%c0_65, %c0_66, %c0_67] : memref<2x16x3xf32, #tpu.memory_space<vmem>>, vector<2x16x3xf32>
    tpu.vector_store %arg5[%c0_65, %c0_66, %c0_67], %139 {strides = array<i32>} : memref<2x16x3xf32, #tpu.memory_space<vmem>>, vector<2x16x3xf32>,
    return
  }
  func.func @transform_0(%arg0: i32) -> (i32, i32, i32) {
    %c0_i32 = arith.constant 0 : i32
    %c0_i32_0 = arith.constant 0 : i32
    %c0_i32_1 = arith.constant 0 : i32
    return %arg0, %c0_i32, %c0_i32_0 : i32, i32, i32
  }
  func.func @transform_1(%arg0: i32) -> (i32, i32, i32) {
    %c0_i32 = arith.constant 0 : i32
    %c0_i32_0 = arith.constant 0 : i32
    %c0_i32_1 = arith.constant 0 : i32
    return %arg0, %c0_i32, %c0_i32_0 : i32, i32, i32
  }
  func.func @transform_2(%arg0: i32) -> (i32, i32, i32) {
    %c0_i32 = arith.constant 0 : i32
    %c0_i32_0 = arith.constant 0 : i32
    %c0_i32_1 = arith.constant 0 : i32
    return %arg0, %c0_i32, %c0_i32_0 : i32, i32, i32
  }
  func.func @transform_3(%arg0: i32) -> (i32, i32) {
    %c0_i32 = arith.constant 0 : i32
    %c0_i32_0 = arith.constant 0 : i32
    %c0_i32_1 = arith.constant 0 : i32
    return %c0_i32, %c0_i32_0 : i32, i32
  }
  func.func @transform_4(%arg0: i32) -> (i32, i32, i32) {
    %c0_i32 = arith.constant 0 : i32
    %c0_i32_0 = arith.constant 0 : i32
    %c0_i32_1 = arith.constant 0 : i32
    return %arg0, %c0_i32, %c0_i32_0 : i32, i32, i32
  }
}

</mosaic_0001>

<bundles_post_ra>
// kernel: tpu_custom_call.1
= control target key start
LH: loop header
LB: loop body
LE: loop exit
PB: predicated region body
PF: predicated region fallthrough
CT: control target
= control target key end

     0   :  { %vm61_vm0 = vcmask 130048   ;;  %vm326_vm1 = vcmask 64512   ;;  %vm437_vm2 = vcmask 261120   ;;  %vm3853_vm3 = vcmask 23552   ;;  %s5963_s2 = inlined_call_operand.vmem [shape: f32[2,16,8], index: 2, kind: input, shape index: {}]   ;;  %s5964_s0 = inlined_call_operand.vmem [shape: bf16[2,64,16], index: 0, kind: input, shape index: {}]   ;;  %s5965_s3 = inlined_call_operand.vmem [shape: f32[416,32], index: 3, kind: input, shape index: {}]   ;;  %s5966_s1 = inlined_call_operand.vmem [shape: bf16[2,16,32], index: 1, kind: input, shape index: {}]   ;;  %s5967_s4 = inlined_call_operand.vmem [shape: f32[2,16,3], index: 4, kind: output, shape index: {}]  }
   0x1   :  { %v57_v0 = vld [vmem:[%s5963_s2] sm:$0xff]  ;;  %v58_v1 = vld [vmem:[%s5963_s2 + $0x8] sm:$0xff]  ;;  %v59_v6 = vld [vmem:[%s5963_s2 + $0x10] sm:$0xff] }
   0x2   :  { %v4068_v2 = vld [vmem:[%s5964_s0] sm:$0xff]   ;;  %v4926_v3 = vpack.c.bf16 %v58_v1, %v57_v0  ;;  %v4107_v5 = vld [vmem:[%s5964_s0 + $0x8] sm:$0xff]   ;;  %v60_v7 = vld [vmem:[%s5963_s2 + $0x18] sm:$0xff] }
   0x3   :  { %v5228_v4 = vunpack.c.l.bf16 %v4068_v2  ;;  %v4930_v8 = vpack.c.bf16 %v60_v7, %v59_v6  ;;  %v4110_v9 = vld [vmem:[%s5964_s0 + $0x20] sm:$0xff]   ;;  %v4111_v10 = vld [vmem:[%s5964_s0 + $0x28] sm:$0xff]   ;;  %v5247_v11 = vunpack.c.h.bf16 %v4068_v2  ;;  %v5251_v13 = vunpack.c.l.bf16 %v4107_v5  ;;  %v4108_v16 = vld [vmem:[%s5964_s0 + $0x10] sm:$0xff]  }
   0x4   :  { %4927 = vmatprep.subr.bf16.mxu0 %v4926_v3  ;;  %v5249_v12 = vunpack.c.l.bf16 %v4110_v9  ;;  %v5253_v14 = vunpack.c.h.bf16 %v4110_v9  ;;  %v320_v15 = vld [vmem:[%s5965_s3] sm:$0xff]  ;;  %v5263_v17 = vunpack.c.l.bf16 %v4111_v10  ;;  %v4112_v18 = vld [vmem:[%s5964_s0 + $0x30] sm:$0xff]   ;;  %v5270_v19 = vunpack.c.h.bf16 %v4107_v5  ;;  %v4109_v22 = vld [vmem:[%s5964_s0 + $0x18] sm:$0xff]  }
   0x5   :  { %4422 = vmatprep.mubr.msk.f32.mxu0 %vm61_vm0, %v5228_v4  ;;  %4929 = vmatpush3.bf16.msra.mxu0 %v4926_v3  ;;  %v5274_v20 = vunpack.c.l.bf16 %v4108_v16  ;;  %v5278_v21 = vunpack.c.h.bf16 %v4111_v10  ;;  %v5285_v23 = vunpack.c.l.bf16 %v4112_v18  ;;  %v4113_v24 = vld [vmem:[%s5964_s0 + $0x38] sm:$0xff]   ;;  %v5292_v25 = vunpack.c.h.bf16 %v4108_v16  ;;  %v540_v31 = vld [vmem:[%s5965_s3 + $0x40] sm:$0xff]  ;;  %v428_v33 = vld [vmem:[%s5965_s3 + $0x10] sm:$0xff] }
   0x6   :  { %4931 = vmatprep.subr.bf16.mxu1 %v4930_v8  ;;  %4438 = vmatprep.mubr.msk.f32.mxu1 %vm61_vm0, %v5249_v12  ;;  %v5296_v26 = vunpack.c.l.bf16 %v4109_v22  ;;  %v5300_v27 = vunpack.c.h.bf16 %v4112_v18  ;;  %v5304_v28 = vunpack.c.l.bf16 %v4113_v24  ;;  %v5308_v29 = vunpack.c.h.bf16 %v4109_v22  ;;  %v539_v32 = vld [vmem:[%s5965_s3 + $0x38] sm:$0xff]  ;;  %v430_v36 = vld [vmem:[%s5965_s3 + $0x20] sm:$0xff]  ;;  %v431_v37 = vld [vmem:[%s5965_s3 + $0x28] sm:$0xff] }
   0x7   :  { %4933 = vmatpush3.bf16.msra.mxu1 %v4930_v8  ;;  %4450 = vmatprep.subr.mxu0 %v320_v15  ;;  %v5314_v30 = vunpack.c.h.bf16 %v4113_v24  ;;  %v429_v34 = vld [vmem:[%s5965_s3 + $0x18] sm:$0xff]  ;;  %v4938_v38 = vpack.c.bf16 %v431_v37, %v430_v36  ;;  %v820_v39 = vld [vmem:[%s5965_s3 + $0x50] sm:$0xff]  ;;  %v3878_v58 = vld [vmem:[%s5965_s3 + $0x8] ss:$0 sm:$0xff] }
   0x8   :  { %4423 = vmatmul.mubr.msk.f32.vlgmr.msra.gmra.mrb[0].mxu0 %vm61_vm0, %v5247_v11  ;;  %v4934_v35 = vpack.c.bf16 %v429_v34, %v428_v33  ;;  %v821_v40 = vld [vmem:[%s5965_s3 + $0x58] sm:$0xff]  ;;  %v822_v8 = vld [vmem:[%s5965_s3 + $0x60] sm:$0xff]  ;;  %v823_v9 = vld [vmem:[%s5965_s3 + $0x68] sm:$0xff] }
   0x9   :  { %4425 = vmatprep.mubr.msk.f32.mxu0 %vm61_vm0, %v5251_v13  ;;  %4451 = vmatpush3.msra.mxu0 %v320_v15  ;;  %v4942_v41 = vpack.c.bf16 %v821_v40, %v820_v39  ;;  %v4946_v10 = vpack.c.bf16 %v823_v9, %v822_v8  ;;  %v1112_v15 = vld [vmem:[%s5965_s3 + $0xa0] sm:$0xff]  ;;  %v1113_v16 = vld [vmem:[%s5965_s3 + $0xa8] sm:$0xff]  ;;  %v1114_v22 = vld [vmem:[%s5965_s3 + $0xb0] sm:$0xff] }
   0xa   :  { %4439 = vmatmul.mubr.msk.f32.vlgmr.msra.gmra.mrb[0].mxu1 %vm61_vm0, %v5253_v14  ;;  %4472 = vmatprep.subr.mxu0 %v540_v31  ;;  %v4958_v18 = vpack.c.bf16 %v1113_v16, %v1112_v15  ;;  %v1115_v24 = vld [vmem:[%s5965_s3 + $0xb8] sm:$0xff]  ;;  %v967_v33 = vld [vmem:[%s5965_s3 + $0x80] sm:$0xff]  ;;  %v3904_v39 = vld [vmem:[%s5965_s3 + $0x48] ss:$0 sm:$0xff] }
   0xb   :  { %4441 = vmatprep.mubr.msk.f32.mxu1 %vm61_vm0, %v5263_v17  ;;  %4935 = vmatprep.subr.bf16.mxu1 %v4934_v35  ;;  %v968_v9 = vld [vmem:[%s5965_s3 + $0x88] sm:$0xff] }
   0xc   :  { %4426 = vmatmul.mubr.msk.f32.gmra.mrb[2].mxu0 %vm61_vm0, %v5270_v19  ;;  %4937 = vmatpush3.bf16.msra.mxu1 %v4934_v35  ;;  %v3883_v35 = vld [vmem:[%s5965_s3 + $0x30] ss:$0 sm:$0xff]  ;;  %v1124_v16 = vld [vmem:[%s5965_s3 + $0x108] sm:$0xff] }
   0xd   :  { %4428 = vmatprep.mubr.msk.f32.mxu0 %vm61_vm0, %v5274_v20  ;;  %4939 = vmatprep.subr.bf16.mxu1 %v4938_v38 }
   0xe   :  { %4442 = vmatmul.mubr.msk.f32.gmra.mrb[2].mxu1 %vm61_vm0, %v5278_v21 }
   0xf   :  { %4444 = vmatprep.mubr.msk.f32.mxu1 %vm61_vm0, %v5285_v23 }
  0x10   :  { %4429 = vmatmul.mubr.msk.f32.gmra.mrb[4].mxu0 %vm61_vm0, %v5292_v25  ;;  %4941 = vmatpush3.bf16.msra.mxu1 %v4938_v38 }
  0x11   :  { %4431 = vmatprep.mubr.msk.f32.mxu0 %vm61_vm0, %v5296_v26  ;;  %4943 = vmatprep.subr.bf16.mxu1 %v4942_v41 }
  0x12   :  { %4445 = vmatmul.mubr.msk.f32.gmra.mrb[4].mxu1 %vm61_vm0, %v5300_v27 }
  0x13   :  { %4447 = vmatprep.mubr.msk.f32.mxu1 %vm61_vm0, %v5304_v28 }
  0x14   :  { %4432 = vmatmul.mubr.msk.f32.gmra.mrb[6].mxu0 %vm61_vm0, %v5308_v29 }
  0x15   :  { %4452 = vmatprep.mubr.msk.f32.mxu0 %vm326_vm1, %v57_v0 }
  0x16   :  { %4448 = vmatmul.mubr.msk.f32.gmra.mrb[6].mxu1 %vm61_vm0, %v5314_v30 }
  0x18   :  { %4453 = vmatmul.mubr.msk.f32.vlgmr.msra.gmra.mrb[8].mxu0 %vm326_vm1, %v58_v1 }
  0x19   :  { %4455 = vmatprep.mubr.msk.f32.mxu0 %vm326_vm1, %v59_v6  ;;  %4473 = vmatpush3.msra.mxu0 %v540_v31  ;;  %v966_v31 = vld [vmem:[%s5965_s3 + $0x78] sm:$0xff] }
  0x1a   :  { %4486 = vmatprep.subr.mxu0 %v539_v32  ;;  %v4950_v34 = vpack.c.bf16 %v967_v33, %v966_v31 }
  0x1c   :  { %4456 = vmatmul.mubr.msk.f32.gmra.mrb[10].mxu0 %vm326_vm1, %v60_v7 }
  0xdb   :  { %v4424_v42 = vpop.f32.mrb[0].mxu0 }
  0xdc   :  { %v152_v43 = vpop.f32.mrb[1].mxu0 }
  0xdd   :  { %v4440_v44 = vpop.f32.mrb[0].mxu1 }
  0xde   :  { %v281_v45 = vpop.f32.mrb[1].mxu1 }
  0xdf   :  { %v4427_v46 = vpop.f32.mrb[2].mxu0 }
  0xe0   :  { %v162_v47 = vpop.f32.mrb[3].mxu0 }
  0xe1   :  { %v4443_v48 = vpop.f32.mrb[2].mxu1 }
  0xe2   :  { %v291_v49 = vpop.f32.mrb[3].mxu1 }
  0xe3   :  { %v4430_v50 = vpop.f32.mrb[4].mxu0 }
  0xe4   :  { %v172_v51 = vpop.f32.mrb[5].mxu0 }
  0xe5   :  { %v4446_v52 = vpop.f32.mrb[4].mxu1  ;;  %4474 = vmatprep.mubr.msk.f32.mxu0 %vm326_vm1, %v172_v51 }
  0xe6   :  { %v301_v53 = vpop.f32.mrb[5].mxu1  ;;  %4475 = vmatmul.mubr.msk.f32.vlgmr.msra.gmra.mrb[12].mxu0 %vm326_vm1, %v4430_v50 }
  0xe7   :  { %v4433_v54 = vpop.f32.mrb[6].mxu0  ;;  %4487 = vmatpush3.msra.mxu0 %v539_v32  ;;  %v4962_v32 = vpack.c.bf16 %v1115_v24, %v1114_v22  ;;  %v3905_v24 = vld [vmem:[%s5965_s3 + $0x70] ss:$0 sm:$0xff] }
  0xe8   :  { %v182_v55 = vpop.f32.mrb[7].mxu0  ;;  %4959 = vmatprep.subr.bf16.mxu0 %v4958_v18 }
  0xe9   :  { %v4449_v56 = vpop.f32.mrb[6].mxu1  ;;  %4477 = vmatprep.mubr.msk.f32.mxu0 %vm326_vm1, %v182_v55 }
  0xea   :  { %v311_v57 = vpop.f32.mrb[7].mxu1  ;;  %4478 = vmatmul.mubr.msk.f32.gmra.mrb[14].mxu0 %vm326_vm1, %v4433_v54 }
  0xeb   :  { %4480 = vmatprep.mubr.msk.f32.mxu0 %vm326_vm1, %v301_v53  ;;  %v4454_v59 = vpop.f32.mrb[8].mxu0 }
  0xec   :  { %v411_v60 = vadd.f32 %v4454_v59, %v3878_v58  ;;  %v405_v61 = vpop.f32.mrb[9].mxu0 }
  0xed   :  { %v406_v62 = vadd.f32 %v3878_v58, %v405_v61 }
  0xee   :  { %4481 = vmatmul.mubr.msk.f32.gmra.mrb[16].mxu0 %vm326_vm1, %v4446_v52  ;;  %v425_v63 = vmax.f32 %v411_v60, 0.0 }
  0xef   :  { %4483 = vmatprep.mubr.msk.f32.mxu0 %vm326_vm1, %v311_v57  ;;  %v424_v0 = vmax.f32 %v406_v62, 0.0  ;;  %v4457_v1 = vpop.f32.mrb[10].mxu0 }
  0xf0   :  { %v421_v2 = vadd.f32 %v4457_v1, %v3878_v58  ;;  %v415_v3 = vpop.f32.mrb[11].mxu0 }
  0xf1   :  { %v416_v5 = vadd.f32 %v3878_v58, %v415_v3  ;;  %4466 = vmatprep.mubr.msk.f32.mxu1 %vm437_vm2, %v424_v0 }
  0xf2   :  { %4484 = vmatmul.mubr.msk.f32.gmra.mrb[18].mxu0 %vm326_vm1, %v4449_v56  ;;  %v427_v6 = vmax.f32 %v421_v2, 0.0  ;;  %4467 = vmatmul.mubr.msk.f32.vlgmr.msra.gmra.mrb[8].mxu1 %vm437_vm2, %v425_v63 }
  0xf3   :  { %4488 = vmatprep.mubr.msk.f32.mxu0 %vm326_vm1, %v152_v43  ;;  %v426_v7 = vmax.f32 %v416_v5, 0.0  ;;  %4945 = vmatpush3.bf16.msra.mxu1 %v4942_v41 }
  0xf4   :  { %4947 = vmatprep.subr.bf16.mxu1 %v4946_v10 }
  0xf5   :  { %4469 = vmatprep.mubr.msk.f32.mxu1 %vm437_vm2, %v426_v7 }
  0xf6   :  { %4489 = vmatmul.mubr.msk.f32.vlgmr.msra.gmra.mrb[12].mxu0 %vm326_vm1, %v4424_v42  ;;  %4470 = vmatmul.mubr.msk.f32.gmra.mrb[10].mxu1 %vm437_vm2, %v427_v6 }
  0xf7   :  { %4491 = vmatprep.mubr.msk.f32.mxu0 %vm326_vm1, %v162_v47  ;;  %4949 = vmatpush3.bf16.msra.mxu1 %v4946_v10  ;;  %v969_v10 = vld [vmem:[%s5965_s3 + $0x90] sm:$0xff] }
  0xf8   :  { %4961 = vmatpush3.bf16.msra.mxu0 %v4958_v18  ;;  %4951 = vmatprep.subr.bf16.mxu1 %v4950_v34  ;;  %v4954_v15 = vpack.c.bf16 %v969_v10, %v968_v9  ;;  %v1125_v18 = vld [vmem:[%s5965_s3 + $0x110] sm:$0xff] }
  0xf9   :  { %4963 = vmatprep.subr.bf16.mxu0 %v4962_v32  ;;  %v4966_v22 = vpack.c.bf16 %v1125_v18, %v1124_v16 }
  0xfa   :  { %4492 = vmatmul.mubr.msk.f32.gmra.mrb[14].mxu0 %vm326_vm1, %v4427_v46 }
  0xfb   :  { %4494 = vmatprep.mubr.msk.f32.mxu0 %vm326_vm1, %v281_v45 }
  0xfc   :  { %4965 = vmatpush3.bf16.msra.mxu0 %v4962_v32 }
  0xfe   :  { %4495 = vmatmul.mubr.msk.f32.gmra.mrb[16].mxu0 %vm326_vm1, %v4440_v44 }
  0xff   :  { %4497 = vmatprep.mubr.msk.f32.mxu0 %vm326_vm1, %v291_v49 }
 0x102   :  { %4498 = vmatmul.mubr.msk.f32.gmra.mrb[18].mxu0 %vm326_vm1, %v4443_v48 }
 0x1c5   :  { %v4468_v36 = vpop.f32.mrb[8].mxu1 }
 0x1c6   :  { %v5400_v37 = vadd.f32 %v4468_v36, %v3883_v35  ;;  %v516_v38 = vpop.f32.mrb[9].mxu1  ;;  %v1127_v36 = vld [vmem:[%s5965_s3 + $0x120] sm:$0xff] }
 0x1c7   :  { %v5405_v40 = vadd.f32 %v3883_v35, %v516_v38 }
 0x1c9   :  { %v4490_v41 = vpop.f32.mrb[12].mxu0  ;;  %v4471_v42 = vpop.f32.mrb[10].mxu1 }
 0x1ca   :  { %v805_v43 = vadd.f32 %v4490_v41, %v3904_v39  ;;  %v760_v44 = vpop.f32.mrb[13].mxu0  ;;  %v532_v45 = vadd.f32 %v4471_v42, %v3883_v35  ;;  %v526_v46 = vpop.f32.mrb[11].mxu1 }
 0x1cb   :  { %v804_v47 = vadd.f32 %v3904_v39, %v760_v44  ;;  %v527_v48 = vadd.f32 %v3883_v35, %v526_v46  ;;  %v1126_v35 = vld [vmem:[%s5965_s3 + $0x118] sm:$0xff]  ;;  %v5447_v46 = vmax.f32 %v5400_v37, 0.0 }
 0x1cc   :  { %v5407_v49 = vmax.f32 %v532_v45, 0.0  ;;  %v813_v53 = vmax.f32 %v805_v43, 0.0  ;;  %v4970_v44 = vpack.c.bf16 %v1127_v36, %v1126_v35 }
 0x1cd   :  { %v812_v50 = vmax.f32 %v804_v47, 0.0  ;;  %v4493_v51 = vpop.f32.mrb[14].mxu0  ;;  %v5409_v52 = vmax.f32 %v527_v48, 0.0  ;;  %v5450_v47 = vmax.f32 %v5405_v40, 0.0 }
 0x1ce   :  { %v807_v54 = vadd.f32 %v4493_v51, %v3904_v39  ;;  %v770_v55 = vpop.f32.mrb[15].mxu0 }
 0x1cf   :  { %v806_v56 = vadd.f32 %v3904_v39, %v770_v55  ;;  %4508 = vmatprep.mubr.msk.f32.mxu1 %vm437_vm2, %v812_v50  ;;  %v5414_v57 = vpack.c.bf16 %v5407_v49, %v5409_v52  ;;  %v4974_v37 = vpack.c.bf16 %v5447_v46, %v5450_v47 }
 0x1d0   :  { %4509 = vmatmul.mubr.msk.f32.vlgmr.msra.gmra.mrb[12].mxu1 %vm437_vm2, %v813_v53  ;;  %v815_v60 = vmax.f32 %v807_v54, 0.0 }
 0x1d1   :  { %v814_v58 = vmax.f32 %v806_v56, 0.0  ;;  %v4496_v59 = vpop.f32.mrb[16].mxu0  ;;  %4979 = vmatprep.subr.bf16.mxu0 %v5414_v57  ;;  %4953 = vmatpush3.bf16.msra.mxu1 %v4950_v34 }
 0x1d2   :  { %v809_v61 = vadd.f32 %v4496_v59, %v3904_v39  ;;  %v780_v62 = vpop.f32.mrb[17].mxu0  ;;  %4955 = vmatprep.subr.bf16.mxu1 %v4954_v15 }
 0x1d3   :  { %v808_v63 = vadd.f32 %v3904_v39, %v780_v62  ;;  %4511 = vmatprep.mubr.msk.f32.mxu1 %vm437_vm2, %v814_v58 }
 0x1d4   :  { %4512 = vmatmul.mubr.msk.f32.gmra.mrb[14].mxu1 %vm437_vm2, %v815_v60  ;;  %v817_v2 = vmax.f32 %v809_v61, 0.0 }
 0x1d5   :  { %v816_v0 = vmax.f32 %v808_v63, 0.0  ;;  %v4499_v1 = vpop.f32.mrb[18].mxu0  ;;  %4957 = vmatpush3.bf16.msra.mxu1 %v4954_v15 }
 0x1d6   :  { %v811_v3 = vadd.f32 %v4499_v1, %v3904_v39  ;;  %v790_v5 = vpop.f32.mrb[19].mxu0  ;;  %4967 = vmatprep.subr.bf16.mxu1 %v4966_v22 }
 0x1d7   :  { %v810_v6 = vadd.f32 %v3904_v39, %v790_v5  ;;  %4514 = vmatprep.mubr.msk.f32.mxu1 %vm437_vm2, %v816_v0  ;;  %v3914_v0 = vld [vmem:[%s5965_s3 + $0x98] ss:$0 sm:$0xff] }
 0x1d8   :  { %4515 = vmatmul.mubr.msk.f32.gmra.mrb[16].mxu1 %vm437_vm2, %v817_v2  ;;  %v819_v8 = vmax.f32 %v811_v3, 0.0 }
 0x1d9   :  { %v818_v7 = vmax.f32 %v810_v6, 0.0 }
 0x1db   :  { %4517 = vmatprep.mubr.msk.f32.mxu1 %vm437_vm2, %v818_v7 }
 0x1dc   :  { %4518 = vmatmul.mubr.msk.f32.gmra.mrb[18].mxu1 %vm437_vm2, %v819_v8 }
 0x2a3   :  { %v4510_v31 = vpop.f32.mrb[12].mxu1 }
 0x2a4   :  { %v925_v32 = vadd.f32 %v4510_v31, %v3905_v24  ;;  %v919_v33 = vpop.f32.mrb[13].mxu1 }
 0x2a5   :  { %v920_v34 = vadd.f32 %v3905_v24, %v919_v33 }
 0x2a6   :  { %v959_v41 = vmax.f32 %v925_v32, 0.0 }
 0x2a7   :  { %v958_v38 = vmax.f32 %v920_v34, 0.0  ;;  %v4513_v39 = vpop.f32.mrb[14].mxu1 }
 0x2a8   :  { %v935_v42 = vadd.f32 %v4513_v39, %v3905_v24  ;;  %v929_v43 = vpop.f32.mrb[15].mxu1 }
 0x2a9   :  { %v930_v45 = vadd.f32 %v3905_v24, %v929_v43  ;;  %4528 = vmatprep.mubr.msk.f32.mxu1 %vm437_vm2, %v958_v38 }
 0x2aa   :  { %4529 = vmatmul.mubr.msk.f32.vlgmr.msra.gmra.mrb[20].mxu1 %vm437_vm2, %v959_v41  ;;  %v961_v51 = vmax.f32 %v935_v42, 0.0 }
 0x2ab   :  { %v960_v48 = vmax.f32 %v930_v45, 0.0  ;;  %4969 = vmatpush3.bf16.msra.mxu1 %v4966_v22  ;;  %v4516_v50 = vpop.f32.mrb[16].mxu1 }
 0x2ac   :  { %v945_v53 = vadd.f32 %v4516_v50, %v3905_v24  ;;  %v939_v54 = vpop.f32.mrb[17].mxu1  ;;  %4971 = vmatprep.subr.bf16.mxu1 %v4970_v44  ;;  %v1117_v50 = vld [vmem:[%s5965_s3 + $0xc8] sm:$0xff] }
 0x2ad   :  { %v940_v55 = vadd.f32 %v3905_v24, %v939_v54  ;;  %4531 = vmatprep.mubr.msk.f32.mxu1 %vm437_vm2, %v960_v48  ;;  %v1116_v48 = vld [vmem:[%s5965_s3 + $0xc0] sm:$0xff]  ;;  %v1119_v54 = vld [vmem:[%s5965_s3 + $0xd8] sm:$0xff] }
 0x2ae   :  { %4532 = vmatmul.mubr.msk.f32.gmra.mrb[22].mxu1 %vm437_vm2, %v961_v51  ;;  %v963_v58 = vmax.f32 %v945_v53, 0.0  ;;  %v5527_v51 = vpack.c.bf16 %v1117_v50, %v1116_v48  ;;  %v1118_v53 = vld [vmem:[%s5965_s3 + $0xd0] sm:$0xff] }
 0x2af   :  { %v962_v56 = vmax.f32 %v940_v55, 0.0  ;;  %4973 = vmatpush3.bf16.msra.mxu1 %v4970_v44  ;;  %v4519_v40 = vpop.f32.mrb[18].mxu1  ;;  %v5537_v55 = vpack.c.bf16 %v1119_v54, %v1118_v53 }
 0x2b0   :  { %v955_v59 = vadd.f32 %v4519_v40, %v3905_v24  ;;  %4975 = vmatprep.subr.bf16.mxu1 %v4974_v37  ;;  %v949_v60 = vpop.f32.mrb[19].mxu1 }
 0x2b1   :  { %v950_v61 = vadd.f32 %v3905_v24, %v949_v60  ;;  %4534 = vmatprep.mubr.msk.f32.mxu1 %vm437_vm2, %v962_v56  ;;  %v1121_v60 = vld [vmem:[%s5965_s3 + $0xe8] sm:$0xff] }
 0x2b2   :  { %4535 = vmatmul.mubr.msk.f32.gmra.mrb[24].mxu1 %vm437_vm2, %v963_v58  ;;  %v965_v63 = vmax.f32 %v955_v59, 0.0  ;;  %v1120_v59 = vld [vmem:[%s5965_s3 + $0xe0] sm:$0xff] }
 0x2b3   :  { %v964_v62 = vmax.f32 %v950_v61, 0.0  ;;  %v5551_v61 = vpack.c.bf16 %v1121_v60, %v1120_v59 }
 0x2b5   :  { %4537 = vmatprep.mubr.msk.f32.mxu1 %vm437_vm2, %v964_v62  ;;  %v1122_v62 = vld [vmem:[%s5965_s3 + $0xf0] sm:$0xff] }
 0x2b6   :  { %4538 = vmatmul.mubr.msk.f32.gmra.mrb[26].mxu1 %vm437_vm2, %v965_v63  ;;  %v1123_v63 = vld [vmem:[%s5965_s3 + $0xf8] sm:$0xff] }
 0x2b7   :  { %4568 = vmatprep.mubr.msk.f32.mxu1 %vm437_vm2, %v5450_v47 }
 0x2ba   :  { %4569 = vmatmul.mubr.msk.f32.vlgmr.msra.gmra.mrb[28].mxu1 %vm437_vm2, %v5447_v46 }
 0x2bb   :  { %4977 = vmatpush3.bf16.msra.mxu1 %v4974_v37  ;;  %4571 = vmatprep.mubr.msk.f32.mxu1 %vm437_vm2, %v5409_v52 }
 0x2bc   :  { %4983 = vmatprep.subr.bf16.mxu1 %v5527_v51 }
 0x2be   :  { %4572 = vmatmul.mubr.msk.f32.gmra.mrb[30].mxu1 %vm437_vm2, %v5407_v49 }
 0x2bf   :  { %4578 = vmatprep.mubr.msk.f32.mxu1 %vm61_vm0, %v5228_v4 }
 0x2c2   :  { %4579 = vmatmul.mubr.msk.f32.vlgmr.msra.gmra.mrb[32].mxu1 %vm61_vm0, %v5247_v11 }
 0x2c3   :  { %4581 = vmatprep.mubr.msk.f32.mxu1 %vm61_vm0, %v5251_v13  ;;  %4985 = vmatpush3.bf16.msra.mxu1 %v5527_v51 }
 0x2c4   :  { %4987 = vmatprep.subr.bf16.mxu1 %v5537_v55 }
 0x2c6   :  { %4582 = vmatmul.mubr.msk.f32.gmra.mrb[34].mxu1 %vm61_vm0, %v5270_v19 }
 0x2c7   :  { %4584 = vmatprep.mubr.msk.f32.mxu1 %vm61_vm0, %v5274_v20  ;;  %4989 = vmatpush3.bf16.msra.mxu1 %v5537_v55 }
 0x2c8   :  { %4991 = vmatprep.subr.bf16.mxu1 %v5551_v61 }
 0x2ca   :  { %4585 = vmatmul.mubr.msk.f32.gmra.mrb[36].mxu1 %vm61_vm0, %v5292_v25 }
 0x2cb   :  { %4587 = vmatprep.mubr.msk.f32.mxu1 %vm61_vm0, %v5296_v26 }
 0x2ce   :  { %4588 = vmatmul.mubr.msk.f32.gmra.mrb[38].mxu1 %vm61_vm0, %v5308_v29 }
 0x37d   :  { %v4530_v1 = vpop.f32.mrb[20].mxu1 }
 0x37e   :  { %v1071_v2 = vadd.f32 %v4530_v1, %v3914_v0  ;;  %v1065_v3 = vpop.f32.mrb[21].mxu1  ;;  %v5561_v1 = vpack.c.bf16 %v1123_v63, %v1122_v62 }
 0x37f   :  { %v1066_v5 = vadd.f32 %v3914_v0, %v1065_v3 }
 0x380   :  { %v1105_v8 = vmax.f32 %v1071_v2, 0.0 }
 0x381   :  { %v1104_v6 = vmax.f32 %v1066_v5, 0.0  ;;  %v4533_v7 = vpop.f32.mrb[22].mxu1 }
 0x382   :  { %v1081_v9 = vadd.f32 %v4533_v7, %v3914_v0  ;;  %v1075_v10 = vpop.f32.mrb[23].mxu1 }
 0x383   :  { %v1076_v15 = vadd.f32 %v3914_v0, %v1075_v10  ;;  %4548 = vmatprep.mubr.msk.f32.mxu0 %vm437_vm2, %v1104_v6 }
 0x384   :  { %4549 = vmatmul.mubr.msk.f32.vlgmr.msra.gmra.mrb[20].mxu0 %vm437_vm2, %v1105_v8  ;;  %v1107_v22 = vmax.f32 %v1081_v9, 0.0 }
 0x385   :  { %v1106_v16 = vmax.f32 %v1076_v15, 0.0  ;;  %4981 = vmatpush3.bf16.msra.mxu0 %v5414_v57  ;;  %v4536_v18 = vpop.f32.mrb[24].mxu1 }
 0x386   :  { %v1091_v24 = vadd.f32 %v4536_v18, %v3914_v0  ;;  %v1085_v31 = vpop.f32.mrb[25].mxu1 }
 0x387   :  { %v1086_v32 = vadd.f32 %v3914_v0, %v1085_v31  ;;  %4551 = vmatprep.mubr.msk.f32.mxu0 %vm437_vm2, %v1106_v16 }
 0x388   :  { %4552 = vmatmul.mubr.msk.f32.gmra.mrb[22].mxu0 %vm437_vm2, %v1107_v22  ;;  %v1109_v35 = vmax.f32 %v1091_v24, 0.0 }
 0x389   :  { %v1108_v33 = vmax.f32 %v1086_v32, 0.0  ;;  %v4539_v34 = vpop.f32.mrb[26].mxu1 }
 0x38a   :  { %v1101_v36 = vadd.f32 %v4539_v34, %v3914_v0  ;;  %v1095_v38 = vpop.f32.mrb[27].mxu1 }
 0x38b   :  { %v1096_v39 = vadd.f32 %v3914_v0, %v1095_v38  ;;  %4554 = vmatprep.mubr.msk.f32.mxu0 %vm437_vm2, %v1108_v33  ;;  %v4100_v38 = vld [vmem:[%s5966_s1] sm:$0xff]  }
 0x38c   :  { %4555 = vmatmul.mubr.msk.f32.gmra.mrb[24].mxu0 %vm437_vm2, %v1109_v35  ;;  %v1111_v42 = vmax.f32 %v1101_v36, 0.0 }
 0x38d   :  { %v1110_v57 = vmax.f32 %v1096_v39, 0.0  ;;  %v5495_v41 = vpop.f32.mrb[28].mxu1  ;;  %v5582_v39 = vunpack.c.l.bf16 %v4100_v38 }
 0x38e   :  { %v5497_v43 = vpop.f32.mrb[29].mxu1 }
 0x38f   :  { %4557 = vmatprep.mubr.msk.f32.mxu0 %vm437_vm2, %v1110_v57  ;;  %v3923_v57 = vld [vmem:[%s5965_s3 + $0x100] ss:$0 sm:$0xff] }
 0x390   :  { %4558 = vmatmul.mubr.msk.f32.gmra.mrb[26].mxu0 %vm437_vm2, %v1111_v42 }
 0x391   :  { %v5501_v44 = vpop.f32.mrb[30].mxu1  ;;  %4594 = vmatprep.mubr.msk.f32.mxu0 %vm61_vm0, %v5249_v12 }
 0x392   :  { %v5505_v45 = vpop.f32.mrb[31].mxu1 }
 0x394   :  { %4595 = vmatmul.mubr.msk.f32.vlgmr.msra.gmra.mrb[28].mxu0 %vm61_vm0, %v5253_v14 }
 0x395   :  { %4597 = vmatprep.mubr.msk.f32.mxu0 %vm61_vm0, %v5263_v17  ;;  %v4580_v37 = vpop.f32.mrb[32].mxu1 }
 0x396   :  { %v1434_v56 = vpop.f32.mrb[33].mxu1 }
 0x397   :  { %4614 = vmatprep.mubr.msk.f32.mxu1 %vm437_vm2, %v1434_v56 }
 0x398   :  { %4598 = vmatmul.mubr.msk.f32.gmra.mrb[30].mxu0 %vm61_vm0, %v5278_v21  ;;  %4615 = vmatmul.mubr.msk.f32.vlgmr.msra.gmra.mrb[40].mxu1 %vm437_vm2, %v4580_v37 }
 0x399   :  { %4600 = vmatprep.mubr.msk.f32.mxu0 %vm61_vm0, %v5285_v23  ;;  %v4583_v40 = vpop.f32.mrb[34].mxu1  ;;  %4993 = vmatpush3.bf16.msra.mxu1 %v5551_v61 }
 0x39a   :  { %v1444_v58 = vpop.f32.mrb[35].mxu1  ;;  %4995 = vmatprep.subr.bf16.mxu1 %v5561_v1 }
 0x39b   :  { %4617 = vmatprep.mubr.msk.f32.mxu1 %vm437_vm2, %v1444_v58 }
 0x39c   :  { %4601 = vmatmul.mubr.msk.f32.gmra.mrb[32].mxu0 %vm61_vm0, %v5300_v27  ;;  %4618 = vmatmul.mubr.msk.f32.gmra.mrb[42].mxu1 %vm437_vm2, %v4583_v40 }
 0x39d   :  { %4603 = vmatprep.mubr.msk.f32.mxu0 %vm61_vm0, %v5304_v28  ;;  %v4586_v0 = vpop.f32.mrb[36].mxu1  ;;  %4997 = vmatpush3.bf16.msra.mxu1 %v5561_v1 }
 0x39e   :  { %v1454_v2 = vpop.f32.mrb[37].mxu1 }
 0x3a0   :  { %4604 = vmatmul.mubr.msk.f32.gmra.mrb[34].mxu0 %vm61_vm0, %v5314_v30 }
 0x3a1   :  { %v4589_v3 = vpop.f32.mrb[38].mxu1  ;;  %4654 = vmatprep.mubr.msk.f32.mxu0 %vm437_vm2, %v5582_v39 }
 0x3a2   :  { %v1464_v5 = vpop.f32.mrb[39].mxu1 }
 0x457   :  { %v4550_v6 = vpop.f32.mrb[20].mxu0 }
 0x458   :  { %v1227_v7 = vpop.f32.mrb[21].mxu0  ;;  %v5589_v42 = vadd.f32 %v4550_v6, %v3923_v57 }
 0x459   :  { %v5591_v48 = vadd.f32 %v3923_v57, %v1227_v7 }
 0x45b   :  { %v4553_v8 = vpop.f32.mrb[22].mxu0 }
 0x45c   :  { %v1237_v9 = vpop.f32.mrb[23].mxu0  ;;  %v5595_v56 = vadd.f32 %v4553_v8, %v3923_v57 }
 0x45d   :  { %v5597_v58 = vadd.f32 %v3923_v57, %v1237_v9 }
 0x45f   :  { %v4556_v10 = vpop.f32.mrb[24].mxu0 }
 0x460   :  { %v1247_v15 = vpop.f32.mrb[25].mxu0 }
 0x461   :  { %v5603_v6 = vadd.f32 %v3923_v57, %v1247_v15 }
 0x463   :  { %v4559_v16 = vpop.f32.mrb[26].mxu0 }
 0x464   :  { %v1257_v18 = vpop.f32.mrb[27].mxu0 }
 0x467   :  { %v4596_v22 = vpop.f32.mrb[28].mxu0 }
 0x468   :  { %v1539_v24 = vpop.f32.mrb[29].mxu0 }
 0x469   :  { %4620 = vmatprep.mubr.msk.f32.mxu1 %vm437_vm2, %v1539_v24 }
 0x46a   :  { %4621 = vmatmul.mubr.msk.f32.gmra.mrb[44].mxu1 %vm437_vm2, %v4596_v22 }
 0x46b   :  { %v4599_v31 = vpop.f32.mrb[30].mxu0 }
 0x46c   :  { %v1549_v32 = vpop.f32.mrb[31].mxu0 }
 0x46d   :  { %4623 = vmatprep.mubr.msk.f32.mxu1 %vm437_vm2, %v1549_v32  ;;  %v4114_v32 = vld [vmem:[%s5966_s1 + $0x8] sm:$0xff]  }
 0x46e   :  { %4624 = vmatmul.mubr.msk.f32.gmra.mrb[46].mxu1 %vm437_vm2, %v4599_v31 }
 0x46f   :  { %4634 = vmatprep.mubr.msk.f32.mxu1 %vm437_vm2, %v1454_v2  ;;  %v4602_v33 = vpop.f32.mrb[32].mxu0 }
 0x470   :  { %v1559_v34 = vpop.f32.mrb[33].mxu0 }
 0x472   :  { %4635 = vmatmul.mubr.msk.f32.vlgmr.msra.gmra.mrb[40].mxu1 %vm437_vm2, %v4586_v0 }
 0x473   :  { %4637 = vmatprep.mubr.msk.f32.mxu1 %vm437_vm2, %v1464_v5  ;;  %v4605_v35 = vpop.f32.mrb[34].mxu0 }
 0x474   :  { %v1569_v36 = vpop.f32.mrb[35].mxu0 }
 0x476   :  { %4638 = vmatmul.mubr.msk.f32.gmra.mrb[42].mxu1 %vm437_vm2, %v4589_v3  ;;  %v5601_v3 = vadd.f32 %v4556_v10, %v3923_v57 }
 0x477   :  { %4640 = vmatprep.mubr.msk.f32.mxu1 %vm437_vm2, %v1559_v34  ;;  %v5612_v34 = vadd.f32 %v3923_v57, %v1257_v18  ;;  %v1129_v18 = vld [vmem:[%s5965_s3 + $0x130] sm:$0xff] }
 0x47a   :  { %4641 = vmatmul.mubr.msk.f32.gmra.mrb[44].mxu1 %vm437_vm2, %v4602_v33  ;;  %v5610_v33 = vadd.f32 %v4559_v16, %v3923_v57  ;;  %v1128_v16 = vld [vmem:[%s5965_s3 + $0x128] sm:$0xff] }
 0x47b   :  { %4643 = vmatprep.mubr.msk.f32.mxu1 %vm437_vm2, %v1569_v36  ;;  %v5614_v36 = vunpack.c.h.bf16 %v4100_v38 }
 0x47e   :  { %4644 = vmatmul.mubr.msk.f32.gmra.mrb[46].mxu1 %vm437_vm2, %v4605_v35 }
 0x47f   :  { %4702 = vmatprep.mubr.msk.f32.mxu1 %vm61_vm0, %v5249_v12 }
 0x545   :  { %v4636_v50 = vpop.f32.mrb[40].mxu1 }
 0x546   :  { %v5134_v53 = vadd.f32 %v4636_v50, %v5589_v42  ;;  %v1805_v54 = vpop.f32.mrb[41].mxu1 }
 0x547   :  { %v5135_v37 = vadd.f32 %v1805_v54, %v5591_v48  ;;  %v5617_v54 = vunpack.c.l.bf16 %v4114_v32 }
 0x548   :  { %v1853_v40 = vmax.f32 %v5134_v53, 0.0 }
 0x549   :  { %v1852_v59 = vmax.f32 %v5135_v37, 0.0  ;;  %v4639_v60 = vpop.f32.mrb[42].mxu1 }
 0x54a   :  { %v5136_v62 = vadd.f32 %v4639_v60, %v5595_v56  ;;  %v1815_v63 = vpop.f32.mrb[43].mxu1  ;;  %v5630_v60 = vpack.c.bf16 %v1129_v18, %v1128_v16 }
 0x54b   :  { %v4998_v0 = vpack.c.bf16 %v1853_v40, %v1852_v59  ;;  %v5137_v2 = vadd.f32 %v1815_v63, %v5597_v58  ;;  %v1131_v63 = vld [vmem:[%s5965_s3 + $0x140] sm:$0xff] }
 0x54c   :  { %v1855_v5 = vmax.f32 %v5136_v62, 0.0  ;;  %v1130_v62 = vld [vmem:[%s5965_s3 + $0x138] sm:$0xff] }
 0x54d   :  { %v1854_v7 = vmax.f32 %v5137_v2, 0.0  ;;  %v4642_v22 = vpop.f32.mrb[44].mxu1  ;;  %4999 = vmatprep.subr.bf16.mxu0 %v4998_v0  ;;  %v5641_v2 = vpack.c.bf16 %v1131_v63, %v1130_v62 }
 0x54e   :  { %v5138_v8 = vadd.f32 %v4642_v22, %v5601_v3  ;;  %v1825_v9 = vpop.f32.mrb[45].mxu1  ;;  %5001 = vmatpush3.bf16.msra.mxu0 %v4998_v0  ;;  %v5638_v0 = vunpack.c.h.bf16 %v4114_v32 }
 0x54f   :  { %v5002_v24 = vpack.c.bf16 %v1855_v5, %v1854_v7  ;;  %v5139_v31 = vadd.f32 %v1825_v9, %v5603_v6  ;;  %v3932_v9 = vld [vmem:[%s5965_s3 + $0x148] ss:$0 sm:$0xff] }
 0x550   :  { %v1857_v10 = vmax.f32 %v5138_v8, 0.0 }
 0x551   :  { %v1856_v15 = vmax.f32 %v5139_v31, 0.0  ;;  %v4645_v35 = vpop.f32.mrb[46].mxu1  ;;  %5003 = vmatprep.subr.bf16.mxu0 %v5002_v24  ;;  %v5661_v31 = vadd.f32 %v3932_v9, %v5497_v43  ;;  %v5677_v43 = vadd.f32 %v3932_v9, %v5505_v45 }
 0x552   :  { %v5140_v50 = vadd.f32 %v4645_v35, %v5610_v33  ;;  %v1835_v53 = vpop.f32.mrb[47].mxu1  ;;  %5005 = vmatpush3.bf16.msra.mxu0 %v5002_v24  ;;  %v5658_v24 = vadd.f32 %v5495_v41, %v3932_v9 }
 0x553   :  { %v5006_v37 = vpack.c.bf16 %v1857_v10, %v1856_v15  ;;  %v5141_v40 = vadd.f32 %v1835_v53, %v5612_v34 }
 0x554   :  { %v1859_v59 = vmax.f32 %v5140_v50, 0.0 }
 0x555   :  { %v1858_v38 = vmax.f32 %v5141_v40, 0.0  ;;  %4655 = vmatmul.mubr.msk.f32.vlgmr.msra.gmra.mrb[36].mxu0 %vm437_vm2, %v5614_v36  ;;  %5007 = vmatprep.subr.bf16.mxu0 %v5006_v37  ;;  %v5674_v40 = vadd.f32 %v5501_v44, %v3932_v9 }
 0x556   :  { %5009 = vmatpush3.bf16.msra.mxu0 %v5006_v37  ;;  %4665 = vmatprep.mubr.msk.f32.mxu0 %vm437_vm2, %v5617_v54 }
 0x557   :  { %v5010_v57 = vpack.c.bf16 %v1859_v59, %v1858_v38 }
 0x559   :  { %5011 = vmatprep.subr.bf16.mxu0 %v5010_v57 }
 0x55a   :  { %5013 = vmatpush3.bf16.msra.mxu0 %v5010_v57 }
 0x55b   :  { %5015 = vmatprep.subr.bf16.mxu0 %v5630_v60 }
 0x55d   :  { %4666 = vmatmul.mubr.msk.f32.vlgmr.msra.gmra.mrb[38].mxu0 %vm437_vm2, %v5638_v0 }
 0x55e   :  { %5017 = vmatpush3.bf16.msra.mxu0 %v5630_v60 }
 0x55f   :  { %5019 = vmatprep.subr.bf16.mxu0 %v5641_v2 }
 0x562   :  { %5021 = vmatpush3.bf16.msra.mxu0 %v5641_v2 }
 0x628   :  { %v4656_v5 = vpop.f32.mrb[36].mxu0 }
 0x629   :  { %v1932_v7 = vpop.f32.mrb[37].mxu0 }
 0x62a   :  { %4676 = vmatprep.mubr.msk.f32.mxu0 %vm437_vm2, %v1932_v7 }
 0x62b   :  { %4677 = vmatmul.mubr.msk.f32.vlgmr.msra.gmra.mrb[40].mxu0 %vm437_vm2, %v4656_v5 }
 0x630   :  { %v4667_v22 = vpop.f32.mrb[38].mxu0 }
 0x631   :  { %v2013_v8 = vpop.f32.mrb[39].mxu0 }
 0x632   :  { %4679 = vmatprep.mubr.msk.f32.mxu0 %vm437_vm2, %v2013_v8 }
 0x633   :  { %4680 = vmatmul.mubr.msk.f32.gmra.mrb[42].mxu0 %vm437_vm2, %v4667_v22 }
 0x634   :  { %4686 = vmatprep.mubr.msk.f32.mxu0 %vm61_vm0, %v5228_v4 }
 0x6fe   :  { %v4678_v32 = vpop.f32.mrb[40].mxu0 }
 0x6ff   :  { %v2120_v10 = vadd.f32 %v4678_v32, %v5658_v24  ;;  %v2100_v15 = vpop.f32.mrb[41].mxu0 }
 0x700   :  { %v2119_v35 = vadd.f32 %v2100_v15, %v5661_v31 }
 0x701   :  { %v5666_v50 = vadd.f32 %v2120_v10, %v5447_v46 }
 0x702   :  { %v5669_v53 = vadd.f32 %v2119_v35, %v5450_v47 }
 0x703   :  { %v2128_v37 = vmax.f32 %v5666_v50, 0.0 }
 0x704   :  { %v2127_v41 = vmax.f32 %v5669_v53, 0.0 }
 0x706   :  { %v4681_v59 = vpop.f32.mrb[42].mxu0  ;;  %v5022_v46 = vpack.c.bf16 %v2128_v37, %v2127_v41 }
 0x707   :  { %v2122_v16 = vadd.f32 %v4681_v59, %v5674_v40  ;;  %v2110_v47 = vpop.f32.mrb[43].mxu0 }
 0x708   :  { %v2121_v18 = vadd.f32 %v2110_v47, %v5677_v43  ;;  %5023 = vmatprep.subr.bf16.mxu0 %v5022_v46 }
 0x709   :  { %v5686_v38 = vadd.f32 %v2122_v16, %v5407_v49  ;;  %5025 = vmatpush3.bf16.msra.mxu0 %v5022_v46 }
 0x70a   :  { %v5689_v44 = vadd.f32 %v2121_v18, %v5409_v52  ;;  %5031 = vmatprep.subr.bf16.mxu0 %v5527_v51 }
 0x70b   :  { %v2130_v45 = vmax.f32 %v5686_v38, 0.0 }
 0x70c   :  { %v2129_v57 = vmax.f32 %v5689_v44, 0.0  ;;  %4687 = vmatmul.mubr.msk.f32.vlgmr.msra.gmra.mrb[44].mxu0 %vm61_vm0, %v5247_v11 }
 0x70d   :  { %4689 = vmatprep.mubr.msk.f32.mxu0 %vm61_vm0, %v5251_v13  ;;  %5033 = vmatpush3.bf16.msra.mxu0 %v5527_v51 }
 0x70e   :  { %v5026_v49 = vpack.c.bf16 %v2130_v45, %v2129_v57  ;;  %5035 = vmatprep.subr.bf16.mxu0 %v5537_v55 }
 0x710   :  { %4690 = vmatmul.mubr.msk.f32.gmra.mrb[46].mxu0 %vm61_vm0, %v5270_v19  ;;  %5027 = vmatprep.subr.bf16.mxu1 %v5026_v49 }
 0x711   :  { %5029 = vmatpush3.bf16.msra.mxu1 %v5026_v49  ;;  %4692 = vmatprep.mubr.msk.f32.mxu0 %vm61_vm0, %v5274_v20 }
 0x712   :  { %5037 = vmatpush3.bf16.msra.mxu0 %v5537_v55 }
 0x713   :  { %5039 = vmatprep.subr.bf16.mxu0 %v5551_v61 }
 0x714   :  { %4703 = vmatmul.mubr.msk.f32.vlgmr.msra.gmra.mrb[48].mxu1 %vm61_vm0, %v5253_v14  ;;  %4693 = vmatmul.mubr.msk.f32.gmra.mrb[48].mxu0 %vm61_vm0, %v5292_v25 }
 0x715   :  { %4705 = vmatprep.mubr.msk.f32.mxu1 %vm61_vm0, %v5263_v17  ;;  %4695 = vmatprep.mubr.msk.f32.mxu0 %vm61_vm0, %v5296_v26 }
 0x718   :  { %4706 = vmatmul.mubr.msk.f32.gmra.mrb[50].mxu1 %vm61_vm0, %v5278_v21  ;;  %4696 = vmatmul.mubr.msk.f32.gmra.mrb[50].mxu0 %vm61_vm0, %v5308_v29 }
 0x719   :  { %4708 = vmatprep.mubr.msk.f32.mxu1 %vm61_vm0, %v5285_v23 }
 0x71c   :  { %4709 = vmatmul.mubr.msk.f32.gmra.mrb[52].mxu1 %vm61_vm0, %v5300_v27 }
 0x71d   :  { %4711 = vmatprep.mubr.msk.f32.mxu1 %vm61_vm0, %v5304_v28 }
 0x720   :  { %4712 = vmatmul.mubr.msk.f32.gmra.mrb[54].mxu1 %vm61_vm0, %v5314_v30 }
 0x721   :  { %4762 = vmatprep.mubr.msk.f32.mxu1 %vm437_vm2, %v5582_v39 }
 0x7df   :  { %v4688_v52 = vpop.f32.mrb[44].mxu0 }
 0x7e0   :  { %v2197_v62 = vpop.f32.mrb[45].mxu0 }
 0x7e1   :  { %4722 = vmatprep.mubr.msk.f32.mxu0 %vm437_vm2, %v2197_v62 }
 0x7e2   :  { %4723 = vmatmul.mubr.msk.f32.vlgmr.msra.gmra.mrb[52].mxu0 %vm437_vm2, %v4688_v52 }
 0x7e3   :  { %v4691_v63 = vpop.f32.mrb[46].mxu0  ;;  %5041 = vmatpush3.bf16.msra.mxu0 %v5551_v61 }
 0x7e4   :  { %v2207_v5 = vpop.f32.mrb[47].mxu0  ;;  %5043 = vmatprep.subr.bf16.mxu0 %v5561_v1 }
 0x7e5   :  { %4725 = vmatprep.mubr.msk.f32.mxu0 %vm437_vm2, %v2207_v5 }
 0x7e6   :  { %4726 = vmatmul.mubr.msk.f32.gmra.mrb[54].mxu0 %vm437_vm2, %v4691_v63 }
 0x7e7   :  { %v4704_v7 = vpop.f32.mrb[48].mxu1  ;;  %v4694_v22 = vpop.f32.mrb[48].mxu0  ;;  %5045 = vmatpush3.bf16.msra.mxu0 %v5561_v1 }
 0x7e8   :  { %v2302_v8 = vpop.f32.mrb[49].mxu1  ;;  %v2217_v9 = vpop.f32.mrb[49].mxu0 }
 0x7e9   :  { %4728 = vmatprep.mubr.msk.f32.mxu0 %vm437_vm2, %v2302_v8 }
 0x7ea   :  { %4729 = vmatmul.mubr.msk.f32.gmra.mrb[56].mxu0 %vm437_vm2, %v4704_v7 }
 0x7eb   :  { %v4707_v32 = vpop.f32.mrb[50].mxu1  ;;  %v4697_v10 = vpop.f32.mrb[50].mxu0 }
 0x7ec   :  { %v2312_v15 = vpop.f32.mrb[51].mxu1  ;;  %v2227_v35 = vpop.f32.mrb[51].mxu0 }
 0x7ed   :  { %4731 = vmatprep.mubr.msk.f32.mxu0 %vm437_vm2, %v2312_v15 }
 0x7ee   :  { %4732 = vmatmul.mubr.msk.f32.gmra.mrb[58].mxu0 %vm437_vm2, %v4707_v32 }
 0x7ef   :  { %4742 = vmatprep.mubr.msk.f32.mxu0 %vm437_vm2, %v2217_v9  ;;  %v4710_v59 = vpop.f32.mrb[52].mxu1 }
 0x7f0   :  { %v2322_v46 = vpop.f32.mrb[53].mxu1 }
 0x7f2   :  { %4743 = vmatmul.mubr.msk.f32.vlgmr.msra.gmra.mrb[52].mxu0 %vm437_vm2, %v4694_v22 }
 0x7f3   :  { %4745 = vmatprep.mubr.msk.f32.mxu0 %vm437_vm2, %v2227_v35  ;;  %v4713_v16 = vpop.f32.mrb[54].mxu1 }
 0x7f4   :  { %v2332_v47 = vpop.f32.mrb[55].mxu1 }
 0x7f6   :  { %4746 = vmatmul.mubr.msk.f32.gmra.mrb[54].mxu0 %vm437_vm2, %v4697_v10 }
 0x7f7   :  { %4748 = vmatprep.mubr.msk.f32.mxu0 %vm437_vm2, %v2322_v46 }
 0x7fa   :  { %4749 = vmatmul.mubr.msk.f32.gmra.mrb[56].mxu0 %vm437_vm2, %v4710_v59 }
 0x7fb   :  { %4751 = vmatprep.mubr.msk.f32.mxu0 %vm437_vm2, %v2332_v47 }
 0x7fe   :  { %4752 = vmatmul.mubr.msk.f32.gmra.mrb[58].mxu0 %vm437_vm2, %v4713_v16 }
 0x7ff   :  { %4810 = vmatprep.mubr.msk.f32.mxu0 %vm61_vm0, %v5249_v12 }
 0x8c5   :  { %v4744_v18 = vpop.f32.mrb[52].mxu0 }
 0x8c6   :  { %v5142_v49 = vadd.f32 %v4744_v18, %v5589_v42  ;;  %v2568_v52 = vpop.f32.mrb[53].mxu0 }
 0x8c7   :  { %v5143_v62 = vadd.f32 %v2568_v52, %v5591_v48 }
 0x8c8   :  { %v2616_v63 = vmax.f32 %v5142_v49, 0.0 }
 0x8c9   :  { %v2615_v5 = vmax.f32 %v5143_v62, 0.0  ;;  %v4747_v7 = vpop.f32.mrb[54].mxu0 }
 0x8ca   :  { %v5144_v22 = vadd.f32 %v4747_v7, %v5595_v56  ;;  %v2578_v8 = vpop.f32.mrb[55].mxu0 }
 0x8cb   :  { %v5046_v9 = vpack.c.bf16 %v2616_v63, %v2615_v5  ;;  %v5145_v32 = vadd.f32 %v2578_v8, %v5597_v58 }
 0x8cc   :  { %v2618_v10 = vmax.f32 %v5144_v22, 0.0 }
 0x8cd   :  { %v2617_v15 = vmax.f32 %v5145_v32, 0.0  ;;  %v4750_v35 = vpop.f32.mrb[56].mxu0  ;;  %5047 = vmatprep.subr.bf16.mxu1 %v5046_v9 }
 0x8ce   :  { %v5146_v12 = vadd.f32 %v4750_v35, %v5601_v3  ;;  %v2588_v59 = vpop.f32.mrb[57].mxu0  ;;  %5049 = vmatpush3.bf16.msra.mxu1 %v5046_v9 }
 0x8cf   :  { %v5050_v46 = vpack.c.bf16 %v2618_v10, %v2617_v15  ;;  %v5147_v16 = vadd.f32 %v2588_v59, %v5603_v6 }
 0x8d0   :  { %v2620_v47 = vmax.f32 %v5146_v12, 0.0 }
 0x8d1   :  { %v2619_v18 = vmax.f32 %v5147_v16, 0.0  ;;  %v4753_v49 = vpop.f32.mrb[58].mxu0  ;;  %5051 = vmatprep.subr.bf16.mxu1 %v5050_v46 }
 0x8d2   :  { %v5148_v52 = vadd.f32 %v4753_v49, %v5610_v33  ;;  %v2598_v62 = vpop.f32.mrb[59].mxu0  ;;  %5053 = vmatpush3.bf16.msra.mxu1 %v5050_v46 }
 0x8d3   :  { %v5054_v63 = vpack.c.bf16 %v2620_v47, %v2619_v18  ;;  %v5149_v5 = vadd.f32 %v2598_v62, %v5612_v34 }
 0x8d4   :  { %v2622_v7 = vmax.f32 %v5148_v52, 0.0 }
 0x8d5   :  { %v2621_v22 = vmax.f32 %v5149_v5, 0.0  ;;  %4763 = vmatmul.mubr.msk.f32.vlgmr.msra.gmra.mrb[56].mxu1 %vm437_vm2, %v5614_v36  ;;  %5055 = vmatprep.subr.bf16.mxu1 %v5054_v63 }
 0x8d6   :  { %5057 = vmatpush3.bf16.msra.mxu1 %v5054_v63  ;;  %4773 = vmatprep.mubr.msk.f32.mxu1 %vm437_vm2, %v5617_v54 }
 0x8d7   :  { %v5058_v8 = vpack.c.bf16 %v2622_v7, %v2621_v22 }
 0x8d9   :  { %5059 = vmatprep.subr.bf16.mxu1 %v5058_v8 }
 0x8da   :  { %5061 = vmatpush3.bf16.msra.mxu1 %v5058_v8 }
 0x8db   :  { %5063 = vmatprep.subr.bf16.mxu1 %v5630_v60 }
 0x8dd   :  { %4774 = vmatmul.mubr.msk.f32.vlgmr.msra.gmra.mrb[58].mxu1 %vm437_vm2, %v5638_v0 }
 0x8de   :  { %5065 = vmatpush3.bf16.msra.mxu1 %v5630_v60 }
 0x8df   :  { %5067 = vmatprep.subr.bf16.mxu1 %v5641_v2 }
 0x8e2   :  { %5069 = vmatpush3.bf16.msra.mxu1 %v5641_v2 }
 0x9a8   :  { %v4764_v9 = vpop.f32.mrb[56].mxu1 }
 0x9a9   :  { %v2689_v32 = vpop.f32.mrb[57].mxu1 }
 0x9aa   :  { %4784 = vmatprep.mubr.msk.f32.mxu1 %vm437_vm2, %v2689_v32 }
 0x9ab   :  { %4785 = vmatmul.mubr.msk.f32.vlgmr.msra.gmra.mrb[60].mxu1 %vm437_vm2, %v4764_v9 }
 0x9b0   :  { %v4775_v10 = vpop.f32.mrb[58].mxu1 }
 0x9b1   :  { %v2764_v15 = vpop.f32.mrb[59].mxu1 }
 0x9b2   :  { %4787 = vmatprep.mubr.msk.f32.mxu1 %vm437_vm2, %v2764_v15 }
 0x9b3   :  { %4788 = vmatmul.mubr.msk.f32.gmra.mrb[62].mxu1 %vm437_vm2, %v4775_v10 }
 0x9b4   :  { %4794 = vmatprep.mubr.msk.f32.mxu1 %vm61_vm0, %v5228_v4 }
 0xa7e   :  { %v4786_v35 = vpop.f32.mrb[60].mxu1 }
 0xa7f   :  { %v2871_v12 = vadd.f32 %v4786_v35, %v5658_v24  ;;  %v2851_v59 = vpop.f32.mrb[61].mxu1 }
 0xa80   :  { %v2870_v46 = vadd.f32 %v2851_v59, %v5661_v31 }
 0xa81   :  { %v5781_v16 = vadd.f32 %v2871_v12, %v2128_v37 }
 0xa82   :  { %v5785_v47 = vadd.f32 %v2870_v46, %v2127_v41 }
 0xa83   :  { %v2879_v18 = vmax.f32 %v5781_v16, 0.0 }
 0xa84   :  { %v2878_v49 = vmax.f32 %v5785_v47, 0.0 }
 0xa86   :  { %v4789_v52 = vpop.f32.mrb[62].mxu1  ;;  %v5070_v4 = vpack.c.bf16 %v2879_v18, %v2878_v49 }
 0xa87   :  { %v2873_v62 = vadd.f32 %v4789_v52, %v5674_v40  ;;  %v2861_v63 = vpop.f32.mrb[63].mxu1 }
 0xa88   :  { %v2872_v50 = vadd.f32 %v2861_v63, %v5677_v43  ;;  %5071 = vmatprep.subr.bf16.mxu1 %v5070_v4 }
 0xa89   :  { %v5797_v53 = vadd.f32 %v2873_v62, %v2130_v45  ;;  %5073 = vmatpush3.bf16.msra.mxu1 %v5070_v4 }
 0xa8a   :  { %v5801_v37 = vadd.f32 %v2872_v50, %v2129_v57  ;;  %5079 = vmatprep.subr.bf16.mxu1 %v5527_v51 }
 0xa8b   :  { %v2881_v41 = vmax.f32 %v5797_v53, 0.0  ;;  %v4057_v53 = vld [vmem:[%s5965_s3 + $0x170] ss:$0 sm:$0xff] }
 0xa8c   :  { %v2880_v5 = vmax.f32 %v5801_v37, 0.0  ;;  %4795 = vmatmul.mubr.msk.f32.vlgmr.msra.gmra.mrb[64].mxu1 %vm61_vm0, %v5247_v11 }
 0xa8d   :  { %4797 = vmatprep.mubr.msk.f32.mxu1 %vm61_vm0, %v5251_v13  ;;  %5081 = vmatpush3.bf16.msra.mxu1 %v5527_v51 }
 0xa8e   :  { %v5074_v38 = vpack.c.bf16 %v2881_v41, %v2880_v5  ;;  %5083 = vmatprep.subr.bf16.mxu1 %v5537_v55 }
 0xa90   :  { %4798 = vmatmul.mubr.msk.f32.gmra.mrb[66].mxu1 %vm61_vm0, %v5270_v19  ;;  %5075 = vmatprep.subr.bf16.mxu0 %v5074_v38 }
 0xa91   :  { %5077 = vmatpush3.bf16.msra.mxu0 %v5074_v38  ;;  %4800 = vmatprep.mubr.msk.f32.mxu1 %vm61_vm0, %v5274_v20 }
 0xa92   :  { %5085 = vmatpush3.bf16.msra.mxu1 %v5537_v55 }
 0xa93   :  { %5087 = vmatprep.subr.bf16.mxu1 %v5551_v61 }
 0xa94   :  { %4811 = vmatmul.mubr.msk.f32.vlgmr.msra.gmra.mrb[60].mxu0 %vm61_vm0, %v5253_v14  ;;  %4801 = vmatmul.mubr.msk.f32.gmra.mrb[68].mxu1 %vm61_vm0, %v5292_v25 }
 0xa95   :  { %4813 = vmatprep.mubr.msk.f32.mxu0 %vm61_vm0, %v5263_v17  ;;  %4803 = vmatprep.mubr.msk.f32.mxu1 %vm61_vm0, %v5296_v26 }
 0xa98   :  { %4814 = vmatmul.mubr.msk.f32.gmra.mrb[62].mxu0 %vm61_vm0, %v5278_v21  ;;  %4804 = vmatmul.mubr.msk.f32.gmra.mrb[70].mxu1 %vm61_vm0, %v5308_v29 }
 0xa99   :  { %4816 = vmatprep.mubr.msk.f32.mxu0 %vm61_vm0, %v5285_v23 }
 0xa9c   :  { %4817 = vmatmul.mubr.msk.f32.gmra.mrb[64].mxu0 %vm61_vm0, %v5300_v27 }
 0xa9d   :  { %4819 = vmatprep.mubr.msk.f32.mxu0 %vm61_vm0, %v5304_v28 }
 0xaa0   :  { %4820 = vmatmul.mubr.msk.f32.gmra.mrb[66].mxu0 %vm61_vm0, %v5314_v30 }
 0xaa1   :  { %4870 = vmatprep.mubr.msk.f32.mxu0 %vm437_vm2, %v5582_v39 }
 0xb5f   :  { %v4796_v11 = vpop.f32.mrb[64].mxu1 }
 0xb60   :  { %v2948_v13 = vpop.f32.mrb[65].mxu1 }
 0xb61   :  { %4830 = vmatprep.mubr.msk.f32.mxu1 %vm437_vm2, %v2948_v13 }
 0xb62   :  { %4831 = vmatmul.mubr.msk.f32.vlgmr.msra.gmra.mrb[72].mxu1 %vm437_vm2, %v4796_v11  ;;  %v3636_v11 = vld [vmem:[%s5965_s3 + $0x168] sm:$0xff] }
 0xb63   :  { %v4799_v14 = vpop.f32.mrb[66].mxu1  ;;  %5089 = vmatpush3.bf16.msra.mxu1 %v5551_v61 }
 0xb64   :  { %v2958_v17 = vpop.f32.mrb[67].mxu1  ;;  %5091 = vmatprep.subr.bf16.mxu1 %v5561_v1 }
 0xb65   :  { %4833 = vmatprep.mubr.msk.f32.mxu1 %vm437_vm2, %v2958_v17  ;;  %v3744_v17 = vld [vmem:[%s5965_s3 + $0x180] sm:$0xff] }
 0xb66   :  { %4834 = vmatmul.mubr.msk.f32.gmra.mrb[74].mxu1 %vm437_vm2, %v4799_v14  ;;  %v3743_v14 = vld [vmem:[%s5965_s3 + $0x178] sm:$0xff] }
 0xb67   :  { %v4812_v19 = vpop.f32.mrb[60].mxu0  ;;  %v4802_v20 = vpop.f32.mrb[68].mxu1  ;;  %5093 = vmatpush3.bf16.msra.mxu1 %v5561_v1 }
 0xb68   :  { %v3053_v21 = vpop.f32.mrb[61].mxu0  ;;  %v2968_v23 = vpop.f32.mrb[69].mxu1 }
 0xb69   :  { %4836 = vmatprep.mubr.msk.f32.mxu1 %vm437_vm2, %v3053_v21 }
 0xb6a   :  { %4837 = vmatmul.mubr.msk.f32.gmra.mrb[76].mxu1 %vm437_vm2, %v4812_v19  ;;  %v5126_v19 = vpack.c.bf16 %v3744_v17, %v3743_v14 }
 0xb6b   :  { %v4815_v25 = vpop.f32.mrb[62].mxu0  ;;  %v4805_v26 = vpop.f32.mrb[70].mxu1 }
 0xb6c   :  { %v3063_v27 = vpop.f32.mrb[63].mxu0  ;;  %v2978_v28 = vpop.f32.mrb[71].mxu1  ;;  %5127 = vmatprep.subr.bf16.mxu1 %v5126_v19 }
 0xb6d   :  { %4839 = vmatprep.mubr.msk.f32.mxu1 %vm437_vm2, %v3063_v27 }
 0xb6e   :  { %4840 = vmatmul.mubr.msk.f32.gmra.mrb[78].mxu1 %vm437_vm2, %v4815_v25 }
 0xb6f   :  { %4850 = vmatprep.mubr.msk.f32.mxu1 %vm437_vm2, %v2968_v23  ;;  %v4818_v29 = vpop.f32.mrb[64].mxu0 }
 0xb70   :  { %v3073_v30 = vpop.f32.mrb[65].mxu0 }
 0xb72   :  { %4851 = vmatmul.mubr.msk.f32.vlgmr.msra.gmra.mrb[72].mxu1 %vm437_vm2, %v4802_v20 }
 0xb73   :  { %4853 = vmatprep.mubr.msk.f32.mxu1 %vm437_vm2, %v2978_v28  ;;  %v4821_v51 = vpop.f32.mrb[66].mxu0  ;;  %5129 = vmatpush3.bf16.msra.mxu1 %v5126_v19 }
 0xb74   :  { %v3083_v55 = vpop.f32.mrb[67].mxu0 }
 0xb76   :  { %4854 = vmatmul.mubr.msk.f32.gmra.mrb[74].mxu1 %vm437_vm2, %v4805_v26 }
 0xb77   :  { %4856 = vmatprep.mubr.msk.f32.mxu1 %vm437_vm2, %v3073_v30 }
 0xb7a   :  { %4857 = vmatmul.mubr.msk.f32.gmra.mrb[76].mxu1 %vm437_vm2, %v4818_v29 }
 0xb7b   :  { %4859 = vmatprep.mubr.msk.f32.mxu1 %vm437_vm2, %v3083_v55 }
 0xb7e   :  { %4860 = vmatmul.mubr.msk.f32.gmra.mrb[78].mxu1 %vm437_vm2, %v4821_v51 }
 0xc45   :  { %v4852_v61 = vpop.f32.mrb[72].mxu1 }
 0xc46   :  { %v5150_v1 = vadd.f32 %v4852_v61, %v5589_v42  ;;  %v3319_v39 = vpop.f32.mrb[73].mxu1 }
 0xc47   :  { %v5151_v44 = vadd.f32 %v3319_v39, %v5591_v48 }
 0xc48   :  { %v3367_v45 = vmax.f32 %v5150_v1, 0.0 }
 0xc49   :  { %v3366_v57 = vmax.f32 %v5151_v44, 0.0  ;;  %v4855_v7 = vpop.f32.mrb[74].mxu1 }
 0xc4a   :  { %v5152_v22 = vadd.f32 %v4855_v7, %v5595_v56  ;;  %v3329_v8 = vpop.f32.mrb[75].mxu1 }
 0xc4b   :  { %v5094_v9 = vpack.c.bf16 %v3367_v45, %v3366_v57  ;;  %v5153_v32 = vadd.f32 %v3329_v8, %v5597_v58 }
 0xc4c   :  { %v3369_v10 = vmax.f32 %v5152_v22, 0.0 }
 0xc4d   :  { %v3368_v15 = vmax.f32 %v5153_v32, 0.0  ;;  %v4858_v35 = vpop.f32.mrb[76].mxu1  ;;  %5095 = vmatprep.subr.bf16.mxu0 %v5094_v9 }
 0xc4e   :  { %v5154_v12 = vadd.f32 %v4858_v35, %v5601_v3  ;;  %v3339_v59 = vpop.f32.mrb[77].mxu1  ;;  %5097 = vmatpush3.bf16.msra.mxu0 %v5094_v9  ;;  %v4062_v9 = vld [vmem:[%s5965_s3 + $0x198] ss:$0 sm:$0xff] }
 0xc4f   :  { %v5098_v42 = vpack.c.bf16 %v3369_v10, %v3368_v15  ;;  %v5155_v48 = vadd.f32 %v3339_v59, %v5603_v6 }
 0xc50   :  { %v3371_v46 = vmax.f32 %v5154_v12, 0.0  ;;  %v5190_v12 = vld [vmem:[%s5963_s2 + $0x8] sm:$0xff] }
 0xc51   :  { %v3370_v52 = vmax.f32 %v5155_v48, 0.0  ;;  %v4861_v4 = vpop.f32.mrb[78].mxu1  ;;  %5099 = vmatprep.subr.bf16.mxu0 %v5098_v42 }
 0xc52   :  { %v5156_v56 = vadd.f32 %v4861_v4, %v5610_v33  ;;  %v3349_v62 = vpop.f32.mrb[79].mxu1  ;;  %5101 = vmatpush3.bf16.msra.mxu0 %v5098_v42  ;;  %v5191_v42 = vld [vmem:[%s5963_s2] sm:$0xff] }
 0xc53   :  { %v5102_v58 = vpack.c.bf16 %v3371_v46, %v3370_v52  ;;  %v5157_v63 = vadd.f32 %v3349_v62, %v5612_v34  ;;  %v5192_v62 = vld [vmem:[%s5963_s2 + $0x18] sm:$0xff] }
 0xc54   :  { %v3373_v50 = vmax.f32 %v5156_v56, 0.0 }
 0xc55   :  { %v3372_v38 = vmax.f32 %v5157_v63, 0.0  ;;  %4871 = vmatmul.mubr.msk.f32.vlgmr.msra.gmra.mrb[68].mxu0 %vm437_vm2, %v5614_v36  ;;  %5103 = vmatprep.subr.bf16.mxu0 %v5102_v58  ;;  %v5193_v63 = vld [vmem:[%s5963_s2 + $0x10] sm:$0xff] }
 0xc56   :  { %5105 = vmatpush3.bf16.msra.mxu0 %v5102_v58  ;;  %4881 = vmatprep.mubr.msk.f32.mxu0 %vm437_vm2, %v5617_v54  ;;  %v3633_v54 = vld [vmem:[%s5965_s3 + $0x150] sm:$0xff] }
 0xc57   :  { %v5106_v3 = vpack.c.bf16 %v3373_v50, %v3372_v38 }
 0xc59   :  { %5107 = vmatprep.subr.bf16.mxu0 %v5106_v3 }
 0xc5a   :  { %5109 = vmatpush3.bf16.msra.mxu0 %v5106_v3 }
 0xc5b   :  { %5111 = vmatprep.subr.bf16.mxu0 %v5630_v60 }
 0xc5d   :  { %4882 = vmatmul.mubr.msk.f32.vlgmr.msra.gmra.mrb[70].mxu0 %vm437_vm2, %v5638_v0 }
 0xc5e   :  { %5113 = vmatpush3.bf16.msra.mxu0 %v5630_v60  ;;  %v3634_v60 = vld [vmem:[%s5965_s3 + $0x158] sm:$0xff] }
 0xc5f   :  { %5115 = vmatprep.subr.bf16.mxu0 %v5641_v2  ;;  %v5118_v0 = vpack.c.bf16 %v3634_v60, %v3633_v54 }
 0xc62   :  { %5117 = vmatpush3.bf16.msra.mxu0 %v5641_v2  ;;  %v3635_v2 = vld [vmem:[%s5965_s3 + $0x160] sm:$0xff] }
 0xc63   :  { %5119 = vmatprep.subr.bf16.mxu0 %v5118_v0  ;;  %v5122_v13 = vpack.c.bf16 %v3636_v11, %v3635_v2 }
 0xd28   :  { %v4872_v6 = vpop.f32.mrb[68].mxu0 }
 0xd29   :  { %v3440_v33 = vpop.f32.mrb[69].mxu0 }
 0xd2a   :  { %4892 = vmatprep.mubr.msk.f32.mxu0 %vm437_vm2, %v3440_v33 }
 0xd2b   :  { %4893 = vmatmul.mubr.msk.f32.vlgmr.msra.gmra.mrb[72].mxu0 %vm437_vm2, %v4872_v6 }
 0xd2c   :  { %5121 = vmatpush3.bf16.msra.mxu0 %v5118_v0 }
 0xd2d   :  { %5123 = vmatprep.subr.bf16.mxu0 %v5122_v13 }
 0xd30   :  { %v4883_v34 = vpop.f32.mrb[70].mxu0  ;;  %5125 = vmatpush3.bf16.msra.mxu0 %v5122_v13 }
 0xd31   :  { %v3515_v36 = vpop.f32.mrb[71].mxu0 }
 0xd32   :  { %4895 = vmatprep.mubr.msk.f32.mxu0 %vm437_vm2, %v3515_v36 }
 0xd33   :  { %4896 = vmatmul.mubr.msk.f32.gmra.mrb[74].mxu0 %vm437_vm2, %v4883_v34 }
 0xdfe   :  { %v4894_v20 = vpop.f32.mrb[72].mxu0 }
 0xdff   :  { %v3622_v21 = vadd.f32 %v4894_v20, %v5658_v24  ;;  %v3602_v23 = vpop.f32.mrb[73].mxu0 }
 0xe00   :  { %v3621_v25 = vadd.f32 %v3602_v23, %v5661_v31 }
 0xe01   :  { %v3626_v26 = vadd.f32 %v3622_v21, %v2879_v18 }
 0xe02   :  { %v3625_v27 = vadd.f32 %v3621_v25, %v2878_v49 }
 0xe03   :  { %v3630_v29 = vmax.f32 %v3626_v26, 0.0 }
 0xe04   :  { %v3629_v28 = vmax.f32 %v3625_v27, 0.0 }
 0xe06   :  { %v4897_v30 = vpop.f32.mrb[74].mxu0  ;;  %4906 = vmatprep.mubr.msk.f32.mxu0 %vm437_vm2, %v3629_v28 }
 0xe07   :  { %v3624_v51 = vadd.f32 %v4897_v30, %v5674_v40  ;;  %v3612_v55 = vpop.f32.mrb[75].mxu0  ;;  %4907 = vmatmul.mubr.msk.f32.vlgmr.msra.gmra.mrb[76].mxu0 %vm437_vm2, %v3630_v29  ;;  %v3745_v40 = vld [vmem:[%s5965_s3 + $0x188] sm:$0xff] }
 0xe08   :  { %v3623_v24 = vadd.f32 %v3612_v55, %v5677_v43  ;;  %v3746_v43 = vld [vmem:[%s5965_s3 + $0x190] sm:$0xff] }
 0xe09   :  { %v3628_v31 = vadd.f32 %v3624_v51, %v2881_v41  ;;  %v5130_v49 = vpack.c.bf16 %v3746_v43, %v3745_v40 }
 0xe0a   :  { %v3627_v16 = vadd.f32 %v3623_v24, %v2880_v5 }
 0xe0b   :  { %v3632_v18 = vmax.f32 %v3628_v31, 0.0  ;;  %5131 = vmatprep.subr.bf16.mxu1 %v5130_v49 }
 0xe0c   :  { %v3631_v47 = vmax.f32 %v3627_v16, 0.0  ;;  %5133 = vmatpush3.bf16.msra.mxu1 %v5130_v49 }
 0xe0e   :  { %4909 = vmatprep.mubr.msk.f32.mxu0 %vm437_vm2, %v3631_v47 }
 0xe0f   :  { %4910 = vmatmul.mubr.msk.f32.gmra.mrb[78].mxu0 %vm437_vm2, %v3632_v18 }
 0xeda   :  { %v4908_v37 = vpop.f32.mrb[76].mxu0 }
 0xedb   :  { %v3726_v41 = vadd.f32 %v4908_v37, %v4057_v53  ;;  %v3720_v5 = vpop.f32.mrb[77].mxu0 }
 0xedc   :  { %v3721_v61 = vadd.f32 %v4057_v53, %v3720_v5 }
 0xedd   :  { %v3740_v39 = vmax.f32 %v3726_v41, 0.0 }
 0xede   :  { %v3739_v1 = vmax.f32 %v3721_v61, 0.0 }
 0xee0   :  { %4920 = vmatprep.mubr.msk.f32.mxu1 %vm437_vm2, %v3739_v1 }
 0xee1   :  { %4921 = vmatmul.mubr.msk.f32.vlgmr.msra.gmra.mrb[80].mxu1 %vm437_vm2, %v3740_v39 }
 0xee2   :  { %v4911_v44 = vpop.f32.mrb[78].mxu0 }
 0xee3   :  { %v3736_v45 = vadd.f32 %v4911_v44, %v4057_v53  ;;  %v3730_v57 = vpop.f32.mrb[79].mxu0 }
 0xee4   :  { %v3731_v7 = vadd.f32 %v4057_v53, %v3730_v57 }
 0xee5   :  { %v3742_v8 = vmax.f32 %v3736_v45, 0.0 }
 0xee6   :  { %v3741_v22 = vmax.f32 %v3731_v7, 0.0 }
 0xee8   :  { %4923 = vmatprep.mubr.msk.f32.mxu1 %vm437_vm2, %v3741_v22 }
 0xee9   :  { %4924 = vmatmul.mubr.msk.f32.gmra.mrb[82].mxu1 %vm437_vm2, %v3742_v8 }
 0xfb4   :  { %v4922_v32 = vpop.f32.mrb[80].mxu1 }
 0xfb5   :  { %v3836_v10 = vadd.f32 %v4922_v32, %v4062_v9  ;;  %v3830_v15 = vpop.f32.mrb[81].mxu1 }
 0xfb6   :  { %v3831_v35 = vadd.f32 %v4062_v9, %v3830_v15 }
 0xfb7   :  { %v3850_v59 = vadd.f32 %v5190_v12, %v3836_v10 }
 0xfb8   :  { %v3849_v48 = vadd.f32 %v5191_v42, %v3831_v35 }
 0xfb9   :  { %3855 = vst.msk [vmem:[%s5967_s4 + $0x8] sm:$0xff] %vm3853_vm3, %v3850_v59 }
 0xfba   :  { %3854 = vst.msk [vmem:[%s5967_s4] sm:$0xff] %vm3853_vm3, %v3849_v48 }
 0xfbc   :  { %v4925_v46 = vpop.f32.mrb[82].mxu1 }
 0xfbd   :  { %v3846_v52 = vadd.f32 %v4925_v46, %v4062_v9  ;;  %v3840_v4 = vpop.f32.mrb[83].mxu1 }
 0xfbe   :  { %v3841_v56 = vadd.f32 %v4062_v9, %v3840_v4 }
 0xfbf   :  { %v3852_v58 = vadd.f32 %v5192_v62, %v3846_v52 }
 0xfc0   :  { %v3851_v50 = vadd.f32 %v5193_v63, %v3841_v56 }
 0xfc1   :  { %3857 = vst.msk [vmem:[%s5967_s4 + $0x18] sm:$0xff] %vm3853_vm3, %v3852_v58 }
 0xfc2   :  { %3856 = vst.msk [vmem:[%s5967_s4 + $0x10] sm:$0xff] %vm3853_vm3, %v3851_v50 }

</bundles_post_ra>
